<compile_context>
chip_gen: v7x
topology: tpu7x:2x2x1
jax: 0.10.0
libtpu: 0.0.40
codegen_flags: <defaults>
</compile_context>

<pallas_src>
import functools
import jax
import jax.numpy as jnp
from jax.experimental import pallas as pl
from jax.experimental.pallas import tpu as pltpu


def encoder_kernel(x_ref, mask_ref,
                   wq_ref, wk_ref, wv_ref, wo_ref,
                   g1_ref, b1_ref,
                   wf1_ref, bf1_ref, wf2_ref, bf2_ref,
                   g2_ref, b2_ref,
                   out_ref,
                   *, n_heads, d_k, eps=1e-5):
    bb, n, d = x_ref.shape
    rows = bb * n
    dh = d // n_heads
    scale = 1.0 / (d_k ** 0.5)

    x3 = x_ref[...].astype(jnp.float32)            # (bb, n, d)
    x2 = x3.reshape(rows, d)                       # fused rows
    mask = mask_ref[...] != 0                      # (bb, n, n) bool, True = masked

    def layernorm(v, g, b):
        mu = jnp.mean(v, axis=-1, keepdims=True)
        var = jnp.mean((v - mu) ** 2, axis=-1, keepdims=True)
        return (v - mu) * jax.lax.rsqrt(var + eps) * g + b

    # ---------------- multi-head self attention on attn_norm(x) ----------------
    z = layernorm(x2, g1_ref[...], b1_ref[...]).astype(jnp.bfloat16)   # (rows, d)

    q = jnp.dot(z, wq_ref[...], preferred_element_type=jnp.float32)   # (rows, d) f32
    k = jnp.dot(z, wk_ref[...], preferred_element_type=jnp.float32)
    v = jnp.dot(z, wv_ref[...], preferred_element_type=jnp.float32)

    # fold 1/sqrt(d_k) into q: masked entries are -inf either way, so ordering
    # (mask-then-scale in torch) is preserved.
    q3 = (q * scale).reshape(bb, n, d).astype(jnp.bfloat16)
    k3 = k.reshape(bb, n, d).astype(jnp.bfloat16)
    v3 = v.reshape(bb, n, d).astype(jnp.bfloat16)

    acc = jnp.zeros((rows, d), jnp.float32)        # attention @ Wo accumulator
    for h in range(n_heads):                       # static head loop, no lane concat
        lo, hi = h * dh, (h + 1) * dh
        s = jnp.einsum('bqd,bkd->bqk', q3[:, :, lo:hi], k3[:, :, lo:hi],
                       preferred_element_type=jnp.float32)             # (bb, n, n)
        s = jnp.where(mask, -jnp.inf, s)
        s = s - jnp.max(s, axis=-1, keepdims=True)
        p = jnp.exp(s)
        p = p * pl.reciprocal(jnp.sum(p, axis=-1, keepdims=True), approx=True)
        head = jnp.einsum('bqk,bkd->bqd', p.astype(jnp.bfloat16), v3[:, :, lo:hi],
                          preferred_element_type=jnp.float32)           # (bb, n, dh)
        # fold Wo into the head loop instead of concatenating heads on the lane dim
        acc = acc + jnp.dot(head.reshape(rows, dh).astype(jnp.bfloat16),
                            wo_ref[lo:hi, :],
                            preferred_element_type=jnp.float32)

    z2 = x2 + acc                                  # attn_dropout = identity (eval)

    # ---------------- position-wise FFN on ffnn_norm(z2) ----------------
    z3 = layernorm(z2, g2_ref[...], b2_ref[...]).astype(jnp.bfloat16)
    hid = jnp.dot(z3, wf1_ref[...], preferred_element_type=jnp.float32) + bf1_ref[...]
    hid = jnp.maximum(hid, 0.0).astype(jnp.bfloat16)
    ff = jnp.dot(hid, wf2_ref[...], preferred_element_type=jnp.float32) + bf2_ref[...]

    out_ref[...] = (z2 + ff).reshape(bb, n, d).astype(out_ref.dtype)   # ffnn_dropout = identity


def encoder_forward(x, mask, params, *, n_heads, d_k, batch_block=None):
    B, n, d = x.shape
    d_ff = params['wf1'].shape[1]

    # Batch block: aim for >=512 fused rows per grid step (amortizes per-step
    # overhead, lane-dense stores), while dividing B evenly.
    if batch_block is None:
        batch_block = max(1, min(B, max(1, 512 // max(n, 1))))
        while B % batch_block:
            batch_block -= 1
    bb = batch_block

    kernel = functools.partial(encoder_kernel, n_heads=n_heads, d_k=d_k)

    bf16 = jnp.bfloat16
    wq = params['wq'].astype(bf16)
    wk = params['wk'].astype(bf16)
    wv = params['wv'].astype(bf16)
    wo = params['wo'].astype(bf16)
    wf1 = params['wf1'].astype(bf16)
    wf2 = params['wf2'].astype(bf16)
    mask8 = mask.astype(jnp.int8)                  # 4x less O(n^2) HBM traffic

    def wspec(shape):
        return pl.BlockSpec(shape, lambda b: (0, 0))

    in_specs = [
        pl.BlockSpec((bb, n, d), lambda b: (b, 0, 0)),   # x
        pl.BlockSpec((bb, n, n), lambda b: (b, 0, 0)),   # mask (int8)
        wspec((d, d)), wspec((d, d)), wspec((d, d)), wspec((d, d)),   # Wq Wk Wv Wo (bf16, pre-transposed)
        wspec((1, d)), wspec((1, d)),                                  # attn_norm gamma/beta (f32)
        wspec((d, d_ff)), wspec((1, d_ff)),                            # ffn layer 1 (bf16 W, f32 b)
        wspec((d_ff, d)), wspec((1, d)),                               # ffn layer 2
        wspec((1, d)), wspec((1, d)),                                  # ffnn_norm gamma/beta (f32)
    ]

    out = pl.pallas_call(
        kernel,
        out_shape=jax.ShapeDtypeStruct((B, n, d), x.dtype),
        grid_spec=pltpu.PrefetchScalarGridSpec(
            num_scalar_prefetch=0,
            grid=(B // bb,),
            in_specs=in_specs,
            out_specs=pl.BlockSpec((bb, n, d), lambda b: (b, 0, 0)),
        ),
        compiler_params=pltpu.CompilerParams(dimension_semantics=("parallel",)),
    )(x, mask8,
      wq, wk, wv, wo,
      params['g1'], params['b1'],
      wf1, params['bf1'], wf2, params['bf2'],
      params['g2'], params['b2'])
    return out, mask    # module returns (z, mask)


def encoder_ref(x, mask, p, *, n_heads, d_k):
    """Pure-JAX f32 reference mirroring the PyTorch forward exactly."""
    def ln(v, g, b):
        mu = v.mean(-1, keepdims=True)
        var = ((v - mu) ** 2).mean(-1, keepdims=True)
        return (v - mu) / jnp.sqrt(var + 1e-5) * g + b

    z = ln(x, p['g1'][0], p['b1'][0])
    q = z @ p['wq']; k = z @ p['wk']; v = z @ p['wv']
    d = x.shape[-1]; dh = d // n_heads
    outs = []
    for h in range(n_heads):
        qh, kh, vh = (t[..., h * dh:(h + 1) * dh] for t in (q, k, v))
        s = jnp.einsum('bmd,bnd->bmn', qh, kh)
        s = jnp.where(mask != 0, -jnp.inf, s) / (d_k ** 0.5)
        a = jax.nn.softmax(s, axis=-1)
        outs.append(jnp.einsum('bmn,bnd->bmd', a, vh))
    attn = jnp.concatenate(outs, -1) @ p['wo']
    z2 = x + attn
    z3 = ln(z2, p['g2'][0], p['b2'][0])
    ff = jnp.maximum(z3 @ p['wf1'] + p['bf1'][0], 0.0) @ p['wf2'] + p['bf2'][0]
    return z2 + ff


def init_params(key, d_model, d_ff):
    ks = jax.random.split(key, 8)

    def xavier(k, fan_in, fan_out):
        lim = (6.0 / (fan_in + fan_out)) ** 0.5
        # torch weight is (out, in); kernel uses the transpose (in, out)
        return jax.random.uniform(k, (fan_in, fan_out), jnp.float32, -lim, lim)

    def torch_linear(k, fan_in, fan_out):
        lim = 1.0 / (fan_in ** 0.5)
        kw, kb = jax.random.split(k)
        w = jax.random.uniform(kw, (fan_in, fan_out), jnp.float32, -lim, lim)
        b = jax.random.uniform(kb, (1, fan_out), jnp.float32, -lim, lim)
        return w, b

    wf1, bf1 = torch_linear(ks[4], d_model, d_ff)
    wf2, bf2 = torch_linear(ks[5], d_ff, d_model)
    return dict(
        wq=xavier(ks[0], d_model, d_model),
        wk=xavier(ks[1], d_model, d_model),
        wv=xavier(ks[2], d_model, d_model),
        wo=xavier(ks[3], d_model, d_model),
        g1=jnp.ones((1, d_model), jnp.float32), b1=jnp.zeros((1, d_model), jnp.float32),
        wf1=wf1, bf1=bf1, wf2=wf2, bf2=bf2,
        g2=jnp.ones((1, d_model), jnp.float32), b2=jnp.zeros((1, d_model), jnp.float32),
    )


if __name__ == "__main__":
    B, n, d_model, d_ff, n_heads, d_k = 2, 8, 32, 64, 4, 8

    key = jax.random.PRNGKey(0)
    kx, km, kp = jax.random.split(key, 3)

    x = jax.random.normal(kx, (B, n, d_model), jnp.float32)
    mask = (jax.random.uniform(km, (B, n, n)) < 0.2).astype(jnp.int32)
    # guarantee no fully-masked row (torch would produce NaN there too)
    eye = jnp.eye(n, dtype=jnp.int32)[None]
    mask = mask * (1 - eye)

    params = init_params(kp, d_model, d_ff)

    out, mask_out = encoder_forward(x, mask, params, n_heads=n_heads, d_k=d_k)
    out = jax.block_until_ready(out)

    ref = encoder_ref(x, mask, params, n_heads=n_heads, d_k=d_k)
    assert out.shape == (B, n, d_model)
    assert mask_out.shape == (B, n, n)
    # Tolerance sized for bf16 MXU operands with f32 accumulation (kernel) vs a
    # pure-f32 reference; structural bugs would show O(1) errors.
    err = jnp.max(jnp.abs(out - ref))
    assert jnp.allclose(out, ref, atol=5e-2, rtol=5e-2), f"max abs err {err}"

    print("KERNEL_OK")
</pallas_src>

<mosaic_0001>
module attributes {stable_mosaic.version = 11 : i64} {
  func.func @encoder_kernel(%arg0: i32, %arg1: memref<2x8x32xf32, #tpu.memory_space<vmem>>, %arg2: memref<2x8x8xi8, #tpu.memory_space<vmem>>, %arg3: memref<32x32xbf16, #tpu.memory_space<vmem>>, %arg4: memref<32x32xbf16, #tpu.memory_space<vmem>>, %arg5: memref<32x32xbf16, #tpu.memory_space<vmem>>, %arg6: memref<32x32xbf16, #tpu.memory_space<vmem>>, %arg7: memref<1x32xf32, #tpu.memory_space<vmem>>, %arg8: memref<1x32xf32, #tpu.memory_space<vmem>>, %arg9: memref<32x64xbf16, #tpu.memory_space<vmem>>, %arg10: memref<1x64xf32, #tpu.memory_space<vmem>>, %arg11: memref<64x32xbf16, #tpu.memory_space<vmem>>, %arg12: memref<1x32xf32, #tpu.memory_space<vmem>>, %arg13: memref<1x32xf32, #tpu.memory_space<vmem>>, %arg14: memref<1x32xf32, #tpu.memory_space<vmem>>, %arg15: memref<2x8x32xf32, #tpu.memory_space<vmem>>) attributes {dimension_semantics = [#tpu.dimension_semantics<parallel>], iteration_bounds = array<i64: 1>, scalar_prefetch = 0 : i64, scratch_operands = 0 : i64, tpu.core_type = #tpu.core_type<tc>, window_params = [{transform_indices = @transform_0, window_bounds = array<i64: 2, 8, 32>}, {transform_indices = @transform_1, window_bounds = array<i64: 2, 8, 8>}, {pipeline_mode = #tpu.pipeline_mode<synchronous>, transform_indices = @transform_2, window_bounds = array<i64: 32, 32>}, {pipeline_mode = #tpu.pipeline_mode<synchronous>, transform_indices = @transform_3, window_bounds = array<i64: 32, 32>}, {pipeline_mode = #tpu.pipeline_mode<synchronous>, transform_indices = @transform_4, window_bounds = array<i64: 32, 32>}, {pipeline_mode = #tpu.pipeline_mode<synchronous>, transform_indices = @transform_5, window_bounds = array<i64: 32, 32>}, {pipeline_mode = #tpu.pipeline_mode<synchronous>, transform_indices = @transform_6, window_bounds = array<i64: 1, 32>}, {pipeline_mode = #tpu.pipeline_mode<synchronous>, transform_indices = @transform_7, window_bounds = array<i64: 1, 32>}, {pipeline_mode = #tpu.pipeline_mode<synchronous>, transform_indices = @transform_8, window_bounds = array<i64: 32, 64>}, {pipeline_mode = #tpu.pipeline_mode<synchronous>, transform_indices = @transform_9, window_bounds = array<i64: 1, 64>}, {pipeline_mode = #tpu.pipeline_mode<synchronous>, transform_indices = @transform_10, window_bounds = array<i64: 64, 32>}, {pipeline_mode = #tpu.pipeline_mode<synchronous>, transform_indices = @transform_11, window_bounds = array<i64: 1, 32>}, {pipeline_mode = #tpu.pipeline_mode<synchronous>, transform_indices = @transform_12, window_bounds = array<i64: 1, 32>}, {pipeline_mode = #tpu.pipeline_mode<synchronous>, transform_indices = @transform_13, window_bounds = array<i64: 1, 32>}, {transform_indices = @transform_14, window_bounds = array<i64: 2, 8, 32>}]} {
    %c0 = arith.constant 0 : index
    %c0_0 = arith.constant 0 : index
    %c0_1 = arith.constant 0 : index
    %0 = vector.load %arg1[%c0, %c0_0, %c0_1] : memref<2x8x32xf32, #tpu.memory_space<vmem>>, vector<2x8x32xf32>
    %1 = vector.shape_cast %0 : vector<2x8x32xf32> to vector<16x32xf32>
    %c0_2 = arith.constant 0 : index
    %c0_3 = arith.constant 0 : index
    %c0_4 = arith.constant 0 : index
    %2 = vector.load %arg2[%c0_2, %c0_3, %c0_4] : memref<2x8x8xi8, #tpu.memory_space<vmem>>, vector<2x8x8xi8>
    %c0_i8 = arith.constant 0 : i8
    %3 = vector.broadcast %c0_i8 : i8 to vector<2x8x8xi8>
    %4 = arith.cmpi ne, %2, %3 : vector<2x8x8xi8>
    %c0_5 = arith.constant 0 : index
    %c0_6 = arith.constant 0 : index
    %5 = vector.load %arg7[%c0_5, %c0_6] : memref<1x32xf32, #tpu.memory_space<vmem>>, vector<1x32xf32>
    %c0_7 = arith.constant 0 : index
    %c0_8 = arith.constant 0 : index
    %6 = vector.load %arg8[%c0_7, %c0_8] : memref<1x32xf32, #tpu.memory_space<vmem>>, vector<1x32xf32>
    %cst = arith.constant dense<0.000000e+00> : vector<16xf32>
    %7 = vector.multi_reduction <add>, %1, %cst [1] : vector<16x32xf32> to vector<16xf32>
    %8 = vector.shape_cast %7 : vector<16xf32> to vector<16x1xf32>
    %cst_9 = arith.constant 3.200000e+01 : f32
    %9 = vector.broadcast %cst_9 : f32 to vector<16x1xf32>
    %10 = arith.divf %8, %9 : vector<16x1xf32>
    %11 = vector.broadcast %10 : vector<16x1xf32> to vector<16x32xf32>
    %12 = arith.subf %1, %11 : vector<16x32xf32>
    %13 = arith.mulf %12, %12 : vector<16x32xf32>
    %cst_10 = arith.constant dense<0.000000e+00> : vector<16xf32>
    %14 = vector.multi_reduction <add>, %13, %cst_10 [1] : vector<16x32xf32> to vector<16xf32>
    %15 = vector.shape_cast %14 : vector<16xf32> to vector<16x1xf32>
    %cst_11 = arith.constant 3.200000e+01 : f32
    %16 = vector.broadcast %cst_11 : f32 to vector<16x1xf32>
    %17 = arith.divf %15, %16 : vector<16x1xf32>
    %18 = vector.broadcast %10 : vector<16x1xf32> to vector<16x32xf32>
    %19 = arith.subf %1, %18 : vector<16x32xf32>
    %cst_12 = arith.constant 9.99999974E-6 : f32
    %20 = vector.broadcast %cst_12 : f32 to vector<16x1xf32>
    %21 = arith.addf %17, %20 : vector<16x1xf32>
    %22 = math.rsqrt %21 : vector<16x1xf32>
    %23 = vector.broadcast %22 : vector<16x1xf32> to vector<16x32xf32>
    %24 = arith.mulf %19, %23 : vector<16x32xf32>
    %25 = vector.broadcast %5 : vector<1x32xf32> to vector<16x32xf32>
    %26 = arith.mulf %24, %25 : vector<16x32xf32>
    %27 = vector.broadcast %6 : vector<1x32xf32> to vector<16x32xf32>
    %28 = arith.addf %26, %27 : vector<16x32xf32>
    %29 = arith.truncf %28 : vector<16x32xf32> to vector<16x32xbf16>
    %c0_13 = arith.constant 0 : index
    %c0_14 = arith.constant 0 : index
    %30 = vector.load %arg3[%c0_13, %c0_14] : memref<32x32xbf16, #tpu.memory_space<vmem>>, vector<32x32xbf16>
    %cst_15 = arith.constant dense<0.000000e+00> : vector<16x32xf32>
    %31 = tpu.matmul %29, %30, %cst_15 {dimension_numbers = #tpu.dot_dimension_numbers<[1], [0], [0], [1], [0, 0, 1, 1], [], []>} : vector<16x32xbf16>, vector<32x32xbf16>, vector<16x32xf32> -> vector<16x32xf32>
    %c0_16 = arith.constant 0 : index
    %c0_17 = arith.constant 0 : index
    %32 = vector.load %arg4[%c0_16, %c0_17] : memref<32x32xbf16, #tpu.memory_space<vmem>>, vector<32x32xbf16>
    %cst_18 = arith.constant dense<0.000000e+00> : vector<16x32xf32>
    %33 = tpu.matmul %29, %32, %cst_18 {dimension_numbers = #tpu.dot_dimension_numbers<[1], [0], [0], [1], [0, 0, 1, 1], [], []>} : vector<16x32xbf16>, vector<32x32xbf16>, vector<16x32xf32> -> vector<16x32xf32>
    %c0_19 = arith.constant 0 : index
    %c0_20 = arith.constant 0 : index
    %34 = vector.load %arg5[%c0_19, %c0_20] : memref<32x32xbf16, #tpu.memory_space<vmem>>, vector<32x32xbf16>
    %cst_21 = arith.constant dense<0.000000e+00> : vector<16x32xf32>
    %35 = tpu.matmul %29, %34, %cst_21 {dimension_numbers = #tpu.dot_dimension_numbers<[1], [0], [0], [1], [0, 0, 1, 1], [], []>} : vector<16x32xbf16>, vector<32x32xbf16>, vector<16x32xf32> -> vector<16x32xf32>
    %cst_22 = arith.constant 0.353553385 : f32
    %36 = vector.broadcast %cst_22 : f32 to vector<16x32xf32>
    %37 = arith.mulf %31, %36 : vector<16x32xf32>
    %38 = vector.shape_cast %37 : vector<16x32xf32> to vector<2x8x32xf32>
    %39 = arith.truncf %38 : vector<2x8x32xf32> to vector<2x8x32xbf16>
    %40 = vector.shape_cast %33 : vector<16x32xf32> to vector<2x8x32xf32>
    %41 = arith.truncf %40 : vector<2x8x32xf32> to vector<2x8x32xbf16>
    %42 = vector.shape_cast %35 : vector<16x32xf32> to vector<2x8x32xf32>
    %43 = arith.truncf %42 : vector<2x8x32xf32> to vector<2x8x32xbf16>
    %cst_23 = arith.constant 0.000000e+00 : f32
    %44 = vector.broadcast %cst_23 : f32 to vector<16x32xf32>
    %45 = vector.extract_strided_slice %39 {offsets = [0, 0, 0], sizes = [2, 8, 8], strides = [1, 1, 1]} : vector<2x8x32xbf16> to vector<2x8x8xbf16>
    %46 = vector.extract_strided_slice %41 {offsets = [0, 0, 0], sizes = [2, 8, 8], strides = [1, 1, 1]} : vector<2x8x32xbf16> to vector<2x8x8xbf16>
    "tpu.trace_start"() <{level = 10 : i32, message = "bqd,bkd->bqk"}> : () -> ()
    %cst_24 = arith.constant dense<0.000000e+00> : vector<2x8x8xf32>
    %47 = tpu.matmul %45, %46, %cst_24 {dimension_numbers = #tpu.dot_dimension_numbers<[2], [2], [1], [1], [0, 0, 0, 1, 1, 1], [0], [0]>} : vector<2x8x8xbf16>, vector<2x8x8xbf16>, vector<2x8x8xf32> -> vector<2x8x8xf32>
    %cst_25 = arith.constant 0xFF800000 : f32
    "tpu.trace_stop"() : () -> ()
    %48 = vector.broadcast %cst_25 : f32 to vector<2x8x8xf32>
    %49 = arith.select %4, %48, %47 : vector<2x8x8xi1>, vector<2x8x8xf32>
    %cst_26 = arith.constant dense<0xFF800000> : vector<2x8xf32>
    %50 = vector.multi_reduction <maximumf>, %49, %cst_26 [2] : vector<2x8x8xf32> to vector<2x8xf32>
    %51 = vector.shape_cast %50 : vector<2x8xf32> to vector<2x8x1xf32>
    %52 = vector.broadcast %51 : vector<2x8x1xf32> to vector<2x8x8xf32>
    %53 = arith.subf %49, %52 : vector<2x8x8xf32>
    %54 = math.exp %53 : vector<2x8x8xf32>
    %cst_27 = arith.constant dense<0.000000e+00> : vector<2x8xf32>
    %55 = vector.multi_reduction <add>, %54, %cst_27 [2] : vector<2x8x8xf32> to vector<2x8xf32>
    %56 = vector.shape_cast %55 : vector<2x8xf32> to vector<2x8x1xf32>
    %57 = tpu.reciprocal %56 {approx = true} : vector<2x8x1xf32> -> vector<2x8x1xf32>
    %58 = vector.broadcast %57 : vector<2x8x1xf32> to vector<2x8x8xf32>
    %59 = arith.mulf %54, %58 : vector<2x8x8xf32>
    %60 = arith.truncf %59 : vector<2x8x8xf32> to vector<2x8x8xbf16>
    %61 = vector.extract_strided_slice %43 {offsets = [0, 0, 0], sizes = [2, 8, 8], strides = [1, 1, 1]} : vector<2x8x32xbf16> to vector<2x8x8xbf16>
    "tpu.trace_start"() <{level = 10 : i32, message = "bqk,bkd->bqd"}> : () -> ()
    %cst_28 = arith.constant dense<0.000000e+00> : vector<2x8x8xf32>
    %62 = tpu.matmul %60, %61, %cst_28 {dimension_numbers = #tpu.dot_dimension_numbers<[2], [1], [1], [2], [0, 0, 0, 1, 1, 2], [0], [0]>} : vector<2x8x8xbf16>, vector<2x8x8xbf16>, vector<2x8x8xf32> -> vector<2x8x8xf32>
    "tpu.trace_stop"() : () -> ()
    %63 = vector.shape_cast %62 : vector<2x8x8xf32> to vector<16x8xf32>
    %64 = arith.truncf %63 : vector<16x8xf32> to vector<16x8xbf16>
    %c0_29 = arith.constant 0 : index
    %c0_30 = arith.constant 0 : index
    %65 = vector.load %arg6[%c0_29, %c0_30] : memref<32x32xbf16, #tpu.memory_space<vmem>>, vector<8x32xbf16>
    %cst_31 = arith.constant dense<0.000000e+00> : vector<16x32xf32>
    %66 = tpu.matmul %64, %65, %cst_31 {dimension_numbers = #tpu.dot_dimension_numbers<[1], [0], [0], [1], [0, 0, 1, 1], [], []>} : vector<16x8xbf16>, vector<8x32xbf16>, vector<16x32xf32> -> vector<16x32xf32>
    %67 = arith.addf %44, %66 : vector<16x32xf32>
    %68 = vector.extract_strided_slice %39 {offsets = [0, 0, 8], sizes = [2, 8, 8], strides = [1, 1, 1]} : vector<2x8x32xbf16> to vector<2x8x8xbf16>
    %69 = vector.extract_strided_slice %41 {offsets = [0, 0, 8], sizes = [2, 8, 8], strides = [1, 1, 1]} : vector<2x8x32xbf16> to vector<2x8x8xbf16>
    "tpu.trace_start"() <{level = 10 : i32, message = "bqd,bkd->bqk"}> : () -> ()
    %cst_32 = arith.constant dense<0.000000e+00> : vector<2x8x8xf32>
    %70 = tpu.matmul %68, %69, %cst_32 {dimension_numbers = #tpu.dot_dimension_numbers<[2], [2], [1], [1], [0, 0, 0, 1, 1, 1], [0], [0]>} : vector<2x8x8xbf16>, vector<2x8x8xbf16>, vector<2x8x8xf32> -> vector<2x8x8xf32>
    %cst_33 = arith.constant 0xFF800000 : f32
    "tpu.trace_stop"() : () -> ()
    %71 = vector.broadcast %cst_33 : f32 to vector<2x8x8xf32>
    %72 = arith.select %4, %71, %70 : vector<2x8x8xi1>, vector<2x8x8xf32>
    %cst_34 = arith.constant dense<0xFF800000> : vector<2x8xf32>
    %73 = vector.multi_reduction <maximumf>, %72, %cst_34 [2] : vector<2x8x8xf32> to vector<2x8xf32>
    %74 = vector.shape_cast %73 : vector<2x8xf32> to vector<2x8x1xf32>
    %75 = vector.broadcast %74 : vector<2x8x1xf32> to vector<2x8x8xf32>
    %76 = arith.subf %72, %75 : vector<2x8x8xf32>
    %77 = math.exp %76 : vector<2x8x8xf32>
    %cst_35 = arith.constant dense<0.000000e+00> : vector<2x8xf32>
    %78 = vector.multi_reduction <add>, %77, %cst_35 [2] : vector<2x8x8xf32> to vector<2x8xf32>
    %79 = vector.shape_cast %78 : vector<2x8xf32> to vector<2x8x1xf32>
    %80 = tpu.reciprocal %79 {approx = true} : vector<2x8x1xf32> -> vector<2x8x1xf32>
    %81 = vector.broadcast %80 : vector<2x8x1xf32> to vector<2x8x8xf32>
    %82 = arith.mulf %77, %81 : vector<2x8x8xf32>
    %83 = arith.truncf %82 : vector<2x8x8xf32> to vector<2x8x8xbf16>
    %84 = vector.extract_strided_slice %43 {offsets = [0, 0, 8], sizes = [2, 8, 8], strides = [1, 1, 1]} : vector<2x8x32xbf16> to vector<2x8x8xbf16>
    "tpu.trace_start"() <{level = 10 : i32, message = "bqk,bkd->bqd"}> : () -> ()
    %cst_36 = arith.constant dense<0.000000e+00> : vector<2x8x8xf32>
    %85 = tpu.matmul %83, %84, %cst_36 {dimension_numbers = #tpu.dot_dimension_numbers<[2], [1], [1], [2], [0, 0, 0, 1, 1, 2], [0], [0]>} : vector<2x8x8xbf16>, vector<2x8x8xbf16>, vector<2x8x8xf32> -> vector<2x8x8xf32>
    "tpu.trace_stop"() : () -> ()
    %86 = vector.shape_cast %85 : vector<2x8x8xf32> to vector<16x8xf32>
    %87 = arith.truncf %86 : vector<16x8xf32> to vector<16x8xbf16>
    %c8 = arith.constant 8 : index
    %c0_37 = arith.constant 0 : index
    %88 = vector.load %arg6[%c8, %c0_37] : memref<32x32xbf16, #tpu.memory_space<vmem>>, vector<8x32xbf16>
    %cst_38 = arith.constant dense<0.000000e+00> : vector<16x32xf32>
    %89 = tpu.matmul %87, %88, %cst_38 {dimension_numbers = #tpu.dot_dimension_numbers<[1], [0], [0], [1], [0, 0, 1, 1], [], []>} : vector<16x8xbf16>, vector<8x32xbf16>, vector<16x32xf32> -> vector<16x32xf32>
    %90 = arith.addf %67, %89 : vector<16x32xf32>
    %91 = vector.extract_strided_slice %39 {offsets = [0, 0, 16], sizes = [2, 8, 8], strides = [1, 1, 1]} : vector<2x8x32xbf16> to vector<2x8x8xbf16>
    %92 = vector.extract_strided_slice %41 {offsets = [0, 0, 16], sizes = [2, 8, 8], strides = [1, 1, 1]} : vector<2x8x32xbf16> to vector<2x8x8xbf16>
    "tpu.trace_start"() <{level = 10 : i32, message = "bqd,bkd->bqk"}> : () -> ()
    %cst_39 = arith.constant dense<0.000000e+00> : vector<2x8x8xf32>
    %93 = tpu.matmul %91, %92, %cst_39 {dimension_numbers = #tpu.dot_dimension_numbers<[2], [2], [1], [1], [0, 0, 0, 1, 1, 1], [0], [0]>} : vector<2x8x8xbf16>, vector<2x8x8xbf16>, vector<2x8x8xf32> -> vector<2x8x8xf32>
    %cst_40 = arith.constant 0xFF800000 : f32
    "tpu.trace_stop"() : () -> ()
    %94 = vector.broadcast %cst_40 : f32 to vector<2x8x8xf32>
    %95 = arith.select %4, %94, %93 : vector<2x8x8xi1>, vector<2x8x8xf32>
    %cst_41 = arith.constant dense<0xFF800000> : vector<2x8xf32>
    %96 = vector.multi_reduction <maximumf>, %95, %cst_41 [2] : vector<2x8x8xf32> to vector<2x8xf32>
    %97 = vector.shape_cast %96 : vector<2x8xf32> to vector<2x8x1xf32>
    %98 = vector.broadcast %97 : vector<2x8x1xf32> to vector<2x8x8xf32>
    %99 = arith.subf %95, %98 : vector<2x8x8xf32>
    %100 = math.exp %99 : vector<2x8x8xf32>
    %cst_42 = arith.constant dense<0.000000e+00> : vector<2x8xf32>
    %101 = vector.multi_reduction <add>, %100, %cst_42 [2] : vector<2x8x8xf32> to vector<2x8xf32>
    %102 = vector.shape_cast %101 : vector<2x8xf32> to vector<2x8x1xf32>
    %103 = tpu.reciprocal %102 {approx = true} : vector<2x8x1xf32> -> vector<2x8x1xf32>
    %104 = vector.broadcast %103 : vector<2x8x1xf32> to vector<2x8x8xf32>
    %105 = arith.mulf %100, %104 : vector<2x8x8xf32>
    %106 = arith.truncf %105 : vector<2x8x8xf32> to vector<2x8x8xbf16>
    %107 = vector.extract_strided_slice %43 {offsets = [0, 0, 16], sizes = [2, 8, 8], strides = [1, 1, 1]} : vector<2x8x32xbf16> to vector<2x8x8xbf16>
    "tpu.trace_start"() <{level = 10 : i32, message = "bqk,bkd->bqd"}> : () -> ()
    %cst_43 = arith.constant dense<0.000000e+00> : vector<2x8x8xf32>
    %108 = tpu.matmul %106, %107, %cst_43 {dimension_numbers = #tpu.dot_dimension_numbers<[2], [1], [1], [2], [0, 0, 0, 1, 1, 2], [0], [0]>} : vector<2x8x8xbf16>, vector<2x8x8xbf16>, vector<2x8x8xf32> -> vector<2x8x8xf32>
    "tpu.trace_stop"() : () -> ()
    %109 = vector.shape_cast %108 : vector<2x8x8xf32> to vector<16x8xf32>
    %110 = arith.truncf %109 : vector<16x8xf32> to vector<16x8xbf16>
    %c16 = arith.constant 16 : index
    %c0_44 = arith.constant 0 : index
    %111 = vector.load %arg6[%c16, %c0_44] : memref<32x32xbf16, #tpu.memory_space<vmem>>, vector<8x32xbf16>
    %cst_45 = arith.constant dense<0.000000e+00> : vector<16x32xf32>
    %112 = tpu.matmul %110, %111, %cst_45 {dimension_numbers = #tpu.dot_dimension_numbers<[1], [0], [0], [1], [0, 0, 1, 1], [], []>} : vector<16x8xbf16>, vector<8x32xbf16>, vector<16x32xf32> -> vector<16x32xf32>
    %113 = arith.addf %90, %112 : vector<16x32xf32>
    %114 = vector.extract_strided_slice %39 {offsets = [0, 0, 24], sizes = [2, 8, 8], strides = [1, 1, 1]} : vector<2x8x32xbf16> to vector<2x8x8xbf16>
    %115 = vector.extract_strided_slice %41 {offsets = [0, 0, 24], sizes = [2, 8, 8], strides = [1, 1, 1]} : vector<2x8x32xbf16> to vector<2x8x8xbf16>
    "tpu.trace_start"() <{level = 10 : i32, message = "bqd,bkd->bqk"}> : () -> ()
    %cst_46 = arith.constant dense<0.000000e+00> : vector<2x8x8xf32>
    %116 = tpu.matmul %114, %115, %cst_46 {dimension_numbers = #tpu.dot_dimension_numbers<[2], [2], [1], [1], [0, 0, 0, 1, 1, 1], [0], [0]>} : vector<2x8x8xbf16>, vector<2x8x8xbf16>, vector<2x8x8xf32> -> vector<2x8x8xf32>
    %cst_47 = arith.constant 0xFF800000 : f32
    "tpu.trace_stop"() : () -> ()
    %117 = vector.broadcast %cst_47 : f32 to vector<2x8x8xf32>
    %118 = arith.select %4, %117, %116 : vector<2x8x8xi1>, vector<2x8x8xf32>
    %cst_48 = arith.constant dense<0xFF800000> : vector<2x8xf32>
    %119 = vector.multi_reduction <maximumf>, %118, %cst_48 [2] : vector<2x8x8xf32> to vector<2x8xf32>
    %120 = vector.shape_cast %119 : vector<2x8xf32> to vector<2x8x1xf32>
    %121 = vector.broadcast %120 : vector<2x8x1xf32> to vector<2x8x8xf32>
    %122 = arith.subf %118, %121 : vector<2x8x8xf32>
    %123 = math.exp %122 : vector<2x8x8xf32>
    %cst_49 = arith.constant dense<0.000000e+00> : vector<2x8xf32>
    %124 = vector.multi_reduction <add>, %123, %cst_49 [2] : vector<2x8x8xf32> to vector<2x8xf32>
    %125 = vector.shape_cast %124 : vector<2x8xf32> to vector<2x8x1xf32>
    %126 = tpu.reciprocal %125 {approx = true} : vector<2x8x1xf32> -> vector<2x8x1xf32>
    %127 = vector.broadcast %126 : vector<2x8x1xf32> to vector<2x8x8xf32>
    %128 = arith.mulf %123, %127 : vector<2x8x8xf32>
    %129 = arith.truncf %128 : vector<2x8x8xf32> to vector<2x8x8xbf16>
    %130 = vector.extract_strided_slice %43 {offsets = [0, 0, 24], sizes = [2, 8, 8], strides = [1, 1, 1]} : vector<2x8x32xbf16> to vector<2x8x8xbf16>
    "tpu.trace_start"() <{level = 10 : i32, message = "bqk,bkd->bqd"}> : () -> ()
    %cst_50 = arith.constant dense<0.000000e+00> : vector<2x8x8xf32>
    %131 = tpu.matmul %129, %130, %cst_50 {dimension_numbers = #tpu.dot_dimension_numbers<[2], [1], [1], [2], [0, 0, 0, 1, 1, 2], [0], [0]>} : vector<2x8x8xbf16>, vector<2x8x8xbf16>, vector<2x8x8xf32> -> vector<2x8x8xf32>
    "tpu.trace_stop"() : () -> ()
    %132 = vector.shape_cast %131 : vector<2x8x8xf32> to vector<16x8xf32>
    %133 = arith.truncf %132 : vector<16x8xf32> to vector<16x8xbf16>
    %c24 = arith.constant 24 : index
    %c0_51 = arith.constant 0 : index
    %134 = vector.load %arg6[%c24, %c0_51] : memref<32x32xbf16, #tpu.memory_space<vmem>>, vector<8x32xbf16>
    %cst_52 = arith.constant dense<0.000000e+00> : vector<16x32xf32>
    %135 = tpu.matmul %133, %134, %cst_52 {dimension_numbers = #tpu.dot_dimension_numbers<[1], [0], [0], [1], [0, 0, 1, 1], [], []>} : vector<16x8xbf16>, vector<8x32xbf16>, vector<16x32xf32> -> vector<16x32xf32>
    %136 = arith.addf %113, %135 : vector<16x32xf32>
    %137 = arith.addf %1, %136 : vector<16x32xf32>
    %c0_53 = arith.constant 0 : index
    %c0_54 = arith.constant 0 : index
    %138 = vector.load %arg13[%c0_53, %c0_54] : memref<1x32xf32, #tpu.memory_space<vmem>>, vector<1x32xf32>
    %c0_55 = arith.constant 0 : index
    %c0_56 = arith.constant 0 : index
    %139 = vector.load %arg14[%c0_55, %c0_56] : memref<1x32xf32, #tpu.memory_space<vmem>>, vector<1x32xf32>
    %cst_57 = arith.constant dense<0.000000e+00> : vector<16xf32>
    %140 = vector.multi_reduction <add>, %137, %cst_57 [1] : vector<16x32xf32> to vector<16xf32>
    %141 = vector.shape_cast %140 : vector<16xf32> to vector<16x1xf32>
    %cst_58 = arith.constant 3.200000e+01 : f32
    %142 = vector.broadcast %cst_58 : f32 to vector<16x1xf32>
    %143 = arith.divf %141, %142 : vector<16x1xf32>
    %144 = vector.broadcast %143 : vector<16x1xf32> to vector<16x32xf32>
    %145 = arith.subf %137, %144 : vector<16x32xf32>
    %146 = arith.mulf %145, %145 : vector<16x32xf32>
    %cst_59 = arith.constant dense<0.000000e+00> : vector<16xf32>
    %147 = vector.multi_reduction <add>, %146, %cst_59 [1] : vector<16x32xf32> to vector<16xf32>
    %148 = vector.shape_cast %147 : vector<16xf32> to vector<16x1xf32>
    %cst_60 = arith.constant 3.200000e+01 : f32
    %149 = vector.broadcast %cst_60 : f32 to vector<16x1xf32>
    %150 = arith.divf %148, %149 : vector<16x1xf32>
    %151 = vector.broadcast %143 : vector<16x1xf32> to vector<16x32xf32>
    %152 = arith.subf %137, %151 : vector<16x32xf32>
    %cst_61 = arith.constant 9.99999974E-6 : f32
    %153 = vector.broadcast %cst_61 : f32 to vector<16x1xf32>
    %154 = arith.addf %150, %153 : vector<16x1xf32>
    %155 = math.rsqrt %154 : vector<16x1xf32>
    %156 = vector.broadcast %155 : vector<16x1xf32> to vector<16x32xf32>
    %157 = arith.mulf %152, %156 : vector<16x32xf32>
    %158 = vector.broadcast %138 : vector<1x32xf32> to vector<16x32xf32>
    %159 = arith.mulf %157, %158 : vector<16x32xf32>
    %160 = vector.broadcast %139 : vector<1x32xf32> to vector<16x32xf32>
    %161 = arith.addf %159, %160 : vector<16x32xf32>
    %162 = arith.truncf %161 : vector<16x32xf32> to vector<16x32xbf16>
    %c0_62 = arith.constant 0 : index
    %c0_63 = arith.constant 0 : index
    %163 = vector.load %arg9[%c0_62, %c0_63] : memref<32x64xbf16, #tpu.memory_space<vmem>>, vector<32x64xbf16>
    %cst_64 = arith.constant dense<0.000000e+00> : vector<16x64xf32>
    %164 = tpu.matmul %162, %163, %cst_64 {dimension_numbers = #tpu.dot_dimension_numbers<[1], [0], [0], [1], [0, 0, 1, 1], [], []>} : vector<16x32xbf16>, vector<32x64xbf16>, vector<16x64xf32> -> vector<16x64xf32>
    %c0_65 = arith.constant 0 : index
    %c0_66 = arith.constant 0 : index
    %165 = vector.load %arg10[%c0_65, %c0_66] : memref<1x64xf32, #tpu.memory_space<vmem>>, vector<1x64xf32>
    %166 = vector.broadcast %165 : vector<1x64xf32> to vector<16x64xf32>
    %167 = arith.addf %164, %166 : vector<16x64xf32>
    %cst_67 = arith.constant 0.000000e+00 : f32
    %168 = vector.broadcast %cst_67 : f32 to vector<16x64xf32>
    %169 = arith.maximumf %167, %168 : vector<16x64xf32>
    %170 = arith.truncf %169 : vector<16x64xf32> to vector<16x64xbf16>
    %c0_68 = arith.constant 0 : index
    %c0_69 = arith.constant 0 : index
    %171 = vector.load %arg11[%c0_68, %c0_69] : memref<64x32xbf16, #tpu.memory_space<vmem>>, vector<64x32xbf16>
    %cst_70 = arith.constant dense<0.000000e+00> : vector<16x32xf32>
    %172 = tpu.matmul %170, %171, %cst_70 {dimension_numbers = #tpu.dot_dimension_numbers<[1], [0], [0], [1], [0, 0, 1, 1], [], []>} : vector<16x64xbf16>, vector<64x32xbf16>, vector<16x32xf32> -> vector<16x32xf32>
    %c0_71 = arith.constant 0 : index
    %c0_72 = arith.constant 0 : index
    %173 = vector.load %arg12[%c0_71, %c0_72] : memref<1x32xf32, #tpu.memory_space<vmem>>, vector<1x32xf32>
    %174 = vector.broadcast %173 : vector<1x32xf32> to vector<16x32xf32>
    %175 = arith.addf %172, %174 : vector<16x32xf32>
    %176 = arith.addf %137, %175 : vector<16x32xf32>
    %177 = vector.shape_cast %176 : vector<16x32xf32> to vector<2x8x32xf32>
    %c0_73 = arith.constant 0 : index
    %c0_74 = arith.constant 0 : index
    %c0_75 = arith.constant 0 : index
    %178 = vector.load %arg15[%c0_73, %c0_74, %c0_75] : memref<2x8x32xf32, #tpu.memory_space<vmem>>, vector<2x8x32xf32>
    tpu.vector_store %arg15[%c0_73, %c0_74, %c0_75], %177 {strides = array<i32>} : memref<2x8x32xf32, #tpu.memory_space<vmem>>, vector<2x8x32xf32>,
    return
  }
  func.func @transform_0(%arg0: i32) -> (i32, i32, i32) {
    %c0_i32 = arith.constant 0 : i32
    %c0_i32_0 = arith.constant 0 : i32
    %c0_i32_1 = arith.constant 0 : i32
    return %arg0, %c0_i32, %c0_i32_0 : i32, i32, i32
  }
  func.func @transform_1(%arg0: i32) -> (i32, i32, i32) {
    %c0_i32 = arith.constant 0 : i32
    %c0_i32_0 = arith.constant 0 : i32
    %c0_i32_1 = arith.constant 0 : i32
    return %arg0, %c0_i32, %c0_i32_0 : i32, i32, i32
  }
  func.func @transform_2(%arg0: i32) -> (i32, i32) {
    %c0_i32 = arith.constant 0 : i32
    %c0_i32_0 = arith.constant 0 : i32
    %c0_i32_1 = arith.constant 0 : i32
    return %c0_i32, %c0_i32_0 : i32, i32
  }
  func.func @transform_3(%arg0: i32) -> (i32, i32) {
    %c0_i32 = arith.constant 0 : i32
    %c0_i32_0 = arith.constant 0 : i32
    %c0_i32_1 = arith.constant 0 : i32
    return %c0_i32, %c0_i32_0 : i32, i32
  }
  func.func @transform_4(%arg0: i32) -> (i32, i32) {
    %c0_i32 = arith.constant 0 : i32
    %c0_i32_0 = arith.constant 0 : i32
    %c0_i32_1 = arith.constant 0 : i32
    return %c0_i32, %c0_i32_0 : i32, i32
  }
  func.func @transform_5(%arg0: i32) -> (i32, i32) {
    %c0_i32 = arith.constant 0 : i32
    %c0_i32_0 = arith.constant 0 : i32
    %c0_i32_1 = arith.constant 0 : i32
    return %c0_i32, %c0_i32_0 : i32, i32
  }
  func.func @transform_6(%arg0: i32) -> (i32, i32) {
    %c0_i32 = arith.constant 0 : i32
    %c0_i32_0 = arith.constant 0 : i32
    %c0_i32_1 = arith.constant 0 : i32
    return %c0_i32, %c0_i32_0 : i32, i32
  }
  func.func @transform_7(%arg0: i32) -> (i32, i32) {
    %c0_i32 = arith.constant 0 : i32
    %c0_i32_0 = arith.constant 0 : i32
    %c0_i32_1 = arith.constant 0 : i32
    return %c0_i32, %c0_i32_0 : i32, i32
  }
  func.func @transform_8(%arg0: i32) -> (i32, i32) {
    %c0_i32 = arith.constant 0 : i32
    %c0_i32_0 = arith.constant 0 : i32
    %c0_i32_1 = arith.constant 0 : i32
    return %c0_i32, %c0_i32_0 : i32, i32
  }
  func.func @transform_9(%arg0: i32) -> (i32, i32) {
    %c0_i32 = arith.constant 0 : i32
    %c0_i32_0 = arith.constant 0 : i32
    %c0_i32_1 = arith.constant 0 : i32
    return %c0_i32, %c0_i32_0 : i32, i32
  }
  func.func @transform_10(%arg0: i32) -> (i32, i32) {
    %c0_i32 = arith.constant 0 : i32
    %c0_i32_0 = arith.constant 0 : i32
    %c0_i32_1 = arith.constant 0 : i32
    return %c0_i32, %c0_i32_0 : i32, i32
  }
  func.func @transform_11(%arg0: i32) -> (i32, i32) {
    %c0_i32 = arith.constant 0 : i32
    %c0_i32_0 = arith.constant 0 : i32
    %c0_i32_1 = arith.constant 0 : i32
    return %c0_i32, %c0_i32_0 : i32, i32
  }
  func.func @transform_12(%arg0: i32) -> (i32, i32) {
    %c0_i32 = arith.constant 0 : i32
    %c0_i32_0 = arith.constant 0 : i32
    %c0_i32_1 = arith.constant 0 : i32
    return %c0_i32, %c0_i32_0 : i32, i32
  }
  func.func @transform_13(%arg0: i32) -> (i32, i32) {
    %c0_i32 = arith.constant 0 : i32
    %c0_i32_0 = arith.constant 0 : i32
    %c0_i32_1 = arith.constant 0 : i32
    return %c0_i32, %c0_i32_0 : i32, i32
  }
  func.func @transform_14(%arg0: i32) -> (i32, i32, i32) {
    %c0_i32 = arith.constant 0 : i32
    %c0_i32_0 = arith.constant 0 : i32
    %c0_i32_1 = arith.constant 0 : i32
    return %arg0, %c0_i32, %c0_i32_0 : i32, i32, i32
  }
}

</mosaic_0001>

<bundles_post_ra>
// kernel: tpu_custom_call.1
= control target key start
LH: loop header
LB: loop body
LE: loop exit
PB: predicated region body
PF: predicated region fallthrough
CT: control target
= control target key end

     0   :  { %19 = vsyncpa [#allocation3], 0  ;;  %s2587_s0 = inlined_call_operand.vmem [shape: f32[2,8,32], index: 0, kind: input, shape index: {}]   ;;  %s2588_s1 = inlined_call_operand.hbm [shape: s8[2,8,8], index: 1, kind: input, shape index: {}]   ;;  %s2589_s2 = inlined_call_operand.vmem [shape: bf16[32,32], index: 2, kind: input, shape index: {}]   ;;  %s2590_s3 = inlined_call_operand.vmem [shape: bf16[32,32], index: 3, kind: input, shape index: {}]   ;;  %s2591_s4 = inlined_call_operand.hbm [shape: bf16[32,32], index: 4, kind: input, shape index: {}]   ;;  %s2592_s5 = inlined_call_operand.hbm [shape: bf16[32,32], index: 5, kind: input, shape index: {}]   ;;  %s2593_s6 = inlined_call_operand.vmem [shape: f32[1,32], index: 6, kind: input, shape index: {}]   ;;  %s2594_s7 = inlined_call_operand.vmem [shape: f32[1,32], index: 7, kind: input, shape index: {}]   ;;  %s2595_s8 = inlined_call_operand.hbm [shape: bf16[32,64], index: 8, kind: input, shape index: {}]   ;;  %s2596_s9 = inlined_call_operand.vmem [shape: f32[1,64], index: 9, kind: input, shape index: {}]   ;;  %s2597_s10 = inlined_call_operand.vmem [shape: bf16[64,32], index: 10, kind: input, shape index: {}]   ;;  %s2598_s11 = inlined_call_operand.vmem [shape: f32[1,32], index: 11, kind: input, shape index: {}]   ;;  %s2599_s12 = inlined_call_operand.vmem [shape: f32[1,32], index: 12, kind: input, shape index: {}]   ;;  %s2600_s13 = inlined_call_operand.vmem [shape: f32[1,32], index: 13, kind: input, shape index: {}]   ;;  %s2601_s14 = inlined_call_operand.hbm [shape: f32[2,8,32], index: 14, kind: output, shape index: {}]  }
   0x1   :  { %20 = vsyncpa [#allocation6], 0 }
   0x2   :  { %21 = vsyncpa [#allocation9], 0 }
   0x3   :  { %22 = vsyncpa [#allocation4], 0  ;;  %s2106_s29 = smov [#allocation5]   ;;  %s1988_s17 = scalar_lea.hbm %s2591_s4, 256 }
   0x4   :  { %s46_s30 = sshll.u32 %s2106_s29, 4  ;;  %p1989_p0 = scmp.ne.s32.totalorder %s2591_s4, %s1988_s17  ;;  %s47_s30 = int_to_ptr.vmem [resolvable:$true] %s46_s30 }
   0x5   :  { %p1992_p1 = scmp.lt.u32.totalorder %s1988_s17, %s2591_s4 }
   0x7   :  { %p1994_p2 = pnand %p1992_p1, %p1989_p0 }
   0x9   :  { %1997 = shalt.err (!%p1994_p2)
}
   0xa   :  { %s1998_s22 = scalar_lea.vmem %s47_s30, 256  ;;  %p2003_p4 = scmp.lt.s32.totalorder %s47_s30, %s47_s30 }
   0xb   :  { %p1999_p3 = scmp.ne.s32.totalorder %s47_s30, %s1998_s22  ;;  %p2004_p5 = scmp.lt.s32.totalorder %s1998_s22, %s1998_s22 }
   0xd   :  { %p2005_p6 = por %p2004_p5, %p2003_p4 }
   0xf   :  { %p2006_p7 = pnand %p2005_p6, %p1999_p3 }
  0x11   :  { %2009 = shalt.err (!%p2006_p7)
}
  0x12   :  { %s2602_s23 = smov 64   ;;  %s2108_s24 = smov 4  }
  0x13   :  { %52 = dma.hbm_to_vmem [thread:$0]  %s2591_s4, 256, %s47_s30, [#allocation6], %s2602_s23, %s2602_s23, %s2108_s24  }
  0x14   :  { %s2109_s27 = smov [#allocation2]   ;;  %s2010_s16 = scalar_lea.hbm %s2588_s1, 64 }
  0x15   :  { %s30_s28 = sshll.u32 %s2109_s27, 4  ;;  %p2011_p8 = scmp.ne.s32.totalorder %s2588_s1, %s2010_s16  ;;  %s31_s28 = int_to_ptr.vmem [resolvable:$true] %s30_s28 }
  0x16   :  { %p2014_p9 = scmp.lt.u32.totalorder %s2010_s16, %s2588_s1 }
  0x18   :  { %p2016_p10 = pnand %p2014_p9, %p2011_p8 }
  0x1a   :  { %2019 = shalt.err (!%p2016_p10)
}
  0x1b   :  { %s2020_s21 = scalar_lea.vmem %s31_s28, 64  ;;  %p2025_p12 = scmp.lt.s32.totalorder %s31_s28, %s31_s28 }
  0x1c   :  { %p2021_p11 = scmp.ne.s32.totalorder %s31_s28, %s2020_s21  ;;  %p2026_p13 = scmp.lt.s32.totalorder %s2020_s21, %s2020_s21 }
  0x1e   :  { %p2027_p0 = por %p2026_p13, %p2025_p12 }
  0x20   :  { %p2028_p1 = pnand %p2027_p0, %p2021_p11 }
  0x22   :  { %2031 = shalt.err (!%p2028_p1)
}
  0x23   :  { %s2110_s4 = smov 32   ;;  %s2111_s30 = smov 2  }
  0x24   :  { %36 = dma.hbm_to_vmem [thread:$0]  %s2588_s1, 64, %s31_s28, [#allocation3], %s2110_s4, %s2110_s4, %s2111_s30  }
  0x25   :  { %s2112_s26 = smov [#allocation7]   ;;  %s2113_s29 = smov [#allocation8]  }
  0x26   :  { %s58_s27 = sshll.u32 %s2112_s26, 4  ;;  %s74_s15 = sshll.u32 %s2113_s29, 4  ;;  %s59_s27 = int_to_ptr.vmem [resolvable:$true] %s58_s27  ;;  %s2225_s15 = int_to_ptr.vmem [resolvable:$true] %s74_s15 }
  0x27   :  { %s2032_s18 = scalar_lea.hbm %s2592_s5, 256 }
  0x28   :  { %p2033_p2 = scmp.ne.s32.totalorder %s2592_s5, %s2032_s18  ;;  %p2036_p3 = scmp.lt.u32.totalorder %s2032_s18, %s2592_s5 }
  0x2a   :  { %p2038_p4 = pnand %p2036_p3, %p2033_p2 }
  0x2c   :  { %2041 = shalt.err (!%p2038_p4)
}
  0x2d   :  { %s2042_s1 = scalar_lea.vmem %s59_s27, 256  ;;  %p2047_p6 = scmp.lt.s32.totalorder %s59_s27, %s59_s27 }
  0x2e   :  { %p2043_p5 = scmp.ne.s32.totalorder %s59_s27, %s2042_s1  ;;  %p2048_p7 = scmp.lt.s32.totalorder %s2042_s1, %s2042_s1 }
  0x30   :  { %p2049_p8 = por %p2048_p7, %p2047_p6 }
  0x32   :  { %p2050_p9 = pnand %p2049_p8, %p2043_p5 }
  0x34   :  { %2053 = shalt.err (!%p2050_p9)
}
  0x35   :  { %s2604_s28 = smov 64   ;;  %s2054_s23 = scalar_lea.hbm %s2595_s8, 256 }
  0x36   :  { %64 = dma.hbm_to_vmem [thread:$0]  %s2592_s5, 256, %s59_s27, [#allocation6], %s2604_s28, %s2604_s28, %s2108_s24  }
  0x37   :  { %p2055_p10 = scmp.ne.s32.totalorder %s2595_s8, %s2054_s23  ;;  %p2058_p11 = scmp.lt.u32.totalorder %s2054_s23, %s2595_s8 }
  0x39   :  { %p2060_p12 = pnand %p2058_p11, %p2055_p10 }
  0x3b   :  { %2063 = shalt.err (!%p2060_p12)
}
  0x3c   :  { %s2064_s18 = scalar_lea.vmem %s2225_s15, 256  ;;  %p2069_p0 = scmp.lt.s32.totalorder %s2225_s15, %s2225_s15 }
  0x3d   :  { %p2065_p13 = scmp.ne.s32.totalorder %s2225_s15, %s2064_s18  ;;  %p2070_p1 = scmp.lt.s32.totalorder %s2064_s18, %s2064_s18 }
  0x3f   :  { %p2071_p2 = por %p2070_p1, %p2069_p0 }
  0x41   :  { %p2072_p3 = pnand %p2071_p2, %p2065_p13 }
  0x43   :  { %2075 = shalt.err (!%p2072_p3)
}
  0x44   :  { %80 = dma.hbm_to_vmem [thread:$0]  %s2595_s8, 256, %s2225_s15, [#allocation9], %s2604_s28, %s2604_s28, %s2108_s24  }
  0x45   :  { %2098 = dma.done.wait [#allocation3], 64  }
  0x46   :  { %2099 = vsyncadd [#allocation3], 4294967232 }
  0x47   :  { %2100 = dma.done.wait [#allocation6], 512  }
  0x48   :  { %2101 = vsyncadd [#allocation6], 4294966784 }
  0x49   :  { %2102 = dma.done.wait [#allocation9], 256  }
  0x4a   :  { %2103 = vsyncadd [#allocation9], 4294967040  ;;  %vm114_vm0 = vcmask 261120   ;;  %v2265_v0 = vld [vmem:[%s2587_s0] sm:$0xff]  ;;  %v2270_v1 = vld [vmem:[%s2587_s0 + $0x8] sm:$0xff]  ;;  %v2114_v16 = vmov 0.0  }
  0x4b   :  { %v115_v2 = vsel %vm114_vm0, %v2265_v0, 0.0  ;;  %v118_v3 = vsel %vm114_vm0, %v2270_v1, 0.0  ;;  %v1936_v14 = vld [vmem:[%s2589_s2] sm:$0xff]   ;;  %1755 = vmatprep.subr.bf16.mxu1 %v2114_v16  ;;  %1771 = vmatprep.subr.bf16.mxu0 %v2114_v16  ;;  %v1938_v17 = vld [vmem:[%s2589_s2 + $0x8] sm:$0xff]   ;;  %vm2115_vm1 = vmmov 0   ;;  %vm341_vm2 = vcmask 64512  }
  0x4c   :  { %116 = vadd.xlane.f32.xlu0 %v115_v2  ;;  %v1937_v15 = vld [vmem:[#allocation5] sm:$0xff]   ;;  %1756 = vmatpush3.bf16.msra.mxu1 %v1936_v14  ;;  %v1939_v18 = vld [vmem:[#allocation5 + $0x8] sm:$0xff]   ;;  %v1655_v27 = vld [vmem:[%s2593_s6] ss:$0 sm:$0xff]  ;;  %vm469_vm3 = vcmask 1043456   ;;  %v2116_v2 = vmov 0  }
  0x4d   :  { %1772 = vmatpush3.bf16.msra.mxu0 %v1937_v15  ;;  %1757 = vmatprep.subr.bf16.mxu1 %v2114_v16  ;;  %v1656_v31 = vld [vmem:[%s2594_s7] ss:$0 sm:$0xff]  ;;  %v1941_v37 = vld [vmem:[%s2590_s3 + $0x8] sm:$0xff]   ;;  %v109_v63 = vld [vmem:[#allocation2 + $0x2] sm:$0x3]  ;;  %s2118_s7 = smov 112  }
  0x4e   :  { %1773 = vmatprep.subr.bf16.mxu0 %v2114_v16  ;;  %1759 = vmatprep.mubr.msk.bf16.mxu1 %vm2115_vm1, %v2114_v16  ;;  %v1940_v35 = vld [vmem:[%s2590_s3] sm:$0xff]   ;;  %vm111_vm5 = vnez %v109_v63  ;;  %s2117_s3 = smov 120   ;;  %s2119_s26 = smov 104   ;;  %vm1587_vm8 = vcmask 523264  }
  0x4f   :  { %1775 = vmatprep.mubr.msk.bf16.mxu0 %vm2115_vm1, %v2114_v16  ;;  %v108_v62 = vld [vmem:[#allocation2] sm:$0x3] }
  0x50   :  { %119 = vadd.xlane.f32.xlu0 %v118_v3  ;;  %1758 = vmatpush3.bf16.msra.mxu1 %v1938_v17  ;;  %vm110_vm4 = vnez %v108_v62 }
  0x51   :  { %1774 = vmatpush3.bf16.msra.mxu0 %v1939_v18  ;;  %1763 = vmatprep.subr.bf16.mxu1 %v2114_v16  ;;  %v434_v3 = vsel %vm110_vm4, 16843009, %v2116_v2 }
  0x52   :  { %1785 = vmatprep.subr.bf16.mxu0 %v2114_v16 }
  0xd9   :  { %v117_v4 = vpop.xlane.xlu0 %116 }
  0xda   :  { %v122_v5 = vmul.f32 0.03125, %v117_v4  ;;  %v435_v4 = vsel %vm111_vm5, 16843009, %v2116_v2 }
  0xdc   :  { %v124_v6 = vsub.f32 %v2265_v0, %v122_v5  ;;  %v436_v5 = vunpack.c.0.s8 %v434_v3 }
  0xdd   :  { %v120_v7 = vpop.xlane.xlu0 %119 }
  0xde   :  { %v123_v8 = vmul.f32 0.03125, %v120_v7  ;;  %v126_v9 = vmul.f32 %v124_v6, %v124_v6  ;;  %vm2351_vm6 = vcmp.ne.s32.totalorder %v436_v5, 0 }
  0xe0   :  { %v125_v10 = vsub.f32 %v2270_v1, %v123_v8  ;;  %v128_v11 = vsel %vm114_vm0, %v126_v9, 0.0 }
  0xe1   :  { %129 = vadd.xlane.f32.xlu1 %v128_v11 }
  0xe2   :  { %v127_v12 = vmul.f32 %v125_v10, %v125_v10 }
  0xe4   :  { %v131_v13 = vsel %vm114_vm0, %v127_v12, 0.0 }
  0xe5   :  { %132 = vadd.xlane.f32.xlu1 %v131_v13 }
 0x16e   :  { %v130_v19 = vpop.xlane.xlu1 %129 }
 0x16f   :  { %v134_v20 = vmul.f32 0.03125, %v130_v19 }
 0x171   :  { %v136_v21 = vadd.f32 1e-05, %v134_v20 }
 0x172   :  { %v133_v22 = vpop.xlane.xlu1 %132 }
 0x173   :  { %1948 = vrsqrt.f32 %v136_v21  ;;  %v135_v23 = vmul.f32 0.03125, %v133_v22 }
 0x175   :  { %v137_v24 = vadd.f32 1e-05, %v135_v23 }
 0x177   :  { %1950 = vrsqrt.f32 %v137_v24 }
 0x17d   :  { %v1949_v25 = vpop.eup %1948 }
 0x17e   :  { %v140_v26 = vmul.f32 %v1949_v25, %v124_v6  ;;  %v437_v6 = vunpack.c.0.s8 %v435_v4 }
 0x180   :  { %v148_v30 = vmul.f32 %v1655_v27, %v140_v26  ;;  %vm2355_vm7 = vcmp.ne.s32.totalorder %v437_v6, 0 }
 0x181   :  { %v1951_v28 = vpop.eup %1950 }
 0x182   :  { %v141_v29 = vmul.f32 %v1951_v28, %v125_v10  ;;  %v156_v33 = vadd.f32 %v1656_v31, %v148_v30 }
 0x184   :  { %v149_v32 = vmul.f32 %v1655_v27, %v141_v29 }
 0x186   :  { %v157_v34 = vadd.f32 %v1656_v31, %v149_v32 }
 0x188   :  { %v158_v36 = vpack.c.bf16 %v157_v34, %v156_v33 }
 0x18a   :  { %1760 = vmatmul.mubr.msk.bf16.vlgmr.msra.gmra.mrb[0].mxu1 %vm114_vm0, %v158_v36  ;;  %1776 = vmatmul.mubr.msk.bf16.vlgmr.msra.gmra.mrb[0].mxu0 %vm114_vm0, %v158_v36 }
 0x18b   :  { %1764 = vmatpush3.bf16.msra.mxu1 %v1940_v35  ;;  %1767 = vmatprep.mubr.msk.bf16.mxu1 %vm2115_vm1, %v2114_v16 }
 0x18c   :  { %1765 = vmatprep.subr.bf16.mxu1 %v2114_v16  ;;  %1787 = vmatprep.mubr.msk.bf16.mxu0 %vm2115_vm1, %v2114_v16 }
 0x18f   :  { %1766 = vmatpush3.bf16.msra.mxu1 %v1941_v37 }
 0x190   :  { %1779 = vmatprep.subr.bf16.mxu1 %v2114_v16 }
 0x192   :  { %1768 = vmatmul.mubr.msk.bf16.vlgmr.msra.gmra.mrb[4].mxu1 %vm114_vm0, %v158_v36 }
 0x193   :  { %1781 = vmatprep.mubr.msk.bf16.mxu1 %vm2115_vm1, %v2114_v16 }
 0x25d   :  { %v212_v38 = vpop.f32.mrb[0].mxu1  ;;  %v326_v39 = vpop.f32.mrb[0].mxu0 }
 0x25e   :  { %v1761_v40 = vpop.f32.mrb[1].mxu1  ;;  %v1777_v41 = vpop.f32.mrb[1].mxu0  ;;  %v333_v53 = vmul.f32 0.35355338, %v212_v38  ;;  %v2328_v55 = vpack.c.bf16 %v326_v39, %v326_v39 }
 0x25f   :  { %v215_v42 = vpop.f32.mrb[2].mxu1  ;;  %v329_v43 = vpop.f32.mrb[2].mxu0 }
 0x260   :  { %v1762_v44 = vpop.f32.mrb[3].mxu1  ;;  %v1778_v45 = vpop.f32.mrb[3].mxu0  ;;  %v334_v56 = vmul.f32 0.35355338, %v215_v42  ;;  %v2331_v57 = vpack.c.bf16 %v333_v53, %v333_v53  ;;  %v2333_v58 = vpack.c.bf16 %v329_v43, %v329_v43  ;;  %v471_v60 = vsel %vm469_vm3, %v2328_v55, 0 }
 0x262   :  { %v2335_v59 = vpack.c.bf16 %v334_v56, %v334_v56  ;;  %v517_v61 = vsel %vm469_vm3, %v2333_v58, 0 }
 0x265   :  { %v269_v46 = vpop.f32.mrb[4].mxu1 }
 0x266   :  { %v2319_v47 = vpack.c.bf16 %v269_v46, %v269_v46  ;;  %v1769_v48 = vpop.f32.mrb[5].mxu1 }
 0x267   :  { %v272_v49 = vpop.f32.mrb[6].mxu1 }
 0x268   :  { %v2321_v50 = vpack.c.bf16 %v272_v49, %v272_v49  ;;  %v1770_v51 = vpop.f32.mrb[7].mxu1  ;;  %v346_v52 = vsel %vm341_vm2, %v2319_v47, 0 }
 0x269   :  { %1780 = vmatpush3.bf16.xpose.msra.mxu1 %v346_v52 }
 0x26a   :  { %v392_v54 = vsel %vm341_vm2, %v2321_v50, 0  ;;  %1791 = vmatprep.subr.bf16.mxu1 %v2114_v16 }
 0x26b   :  { %1786 = vmatpush3.bf16.xpose.msra.mxu0 %v392_v54 }
 0x26c   :  { %1797 = vmatprep.subr.bf16.mxu0 %v2114_v16 }
 0x270   :  { %1782 = vmatmul.mubr.msk.bf16.vlgmr.msra.gmra.mrb[8].mxu1 %vm341_vm2, %v2331_v57 }
 0x271   :  { %1792 = vmatpush3.bf16.msra.mxu1 %v471_v60  ;;  %1793 = vmatprep.mubr.msk.bf16.mxu1 %vm2115_vm1, %v2114_v16 }
 0x272   :  { %1788 = vmatmul.mubr.msk.bf16.vlgmr.msra.gmra.mrb[4].mxu0 %vm341_vm2, %v2335_v59  ;;  %1803 = vmatprep.subr.bf16.mxu1 %v2114_v16 }
 0x273   :  { %1798 = vmatpush3.bf16.msra.mxu0 %v517_v61  ;;  %1799 = vmatprep.mubr.msk.bf16.mxu0 %vm2115_vm1, %v2114_v16 }
 0x274   :  { %1809 = vmatprep.subr.bf16.mxu0 %v2114_v16 }
 0x343   :  { %v382_v8 = vpop.f32.mrb[8].mxu1 }
 0x344   :  { %v440_v10 = vsel %vm2351_vm6, -inf, %v382_v8  ;;  %v1783_v11 = vpop.f32.mrb[9].mxu1 }
 0x345   :  { %v385_v12 = vpop.f32.mrb[10].mxu1  ;;  %v428_v13 = vpop.f32.mrb[4].mxu0  ;;  %v442_v14 = vsel %vm341_vm2, %v440_v10, -inf }
 0x346   :  { %v441_v15 = vsel %vm2355_vm7, -inf, %v428_v13  ;;  %v1789_v17 = vpop.f32.mrb[5].mxu0  ;;  %443 = vmax.xlane.f32.xlu0 %v442_v14  ;;  %v1784_v18 = vpop.f32.mrb[11].mxu1 }
 0x347   :  { %v431_v19 = vpop.f32.mrb[6].mxu0  ;;  %v445_v20 = vsel %vm341_vm2, %v441_v15, -inf }
 0x348   :  { %446 = vmax.xlane.f32.xlu1 %v445_v20  ;;  %v1790_v21 = vpop.f32.mrb[7].mxu0 }
 0x359   :  { %617 = vrot.lane.b32.xlu1 %v2321_v50, %s2117_s3 }
 0x3d3   :  { %v444_v22 = vpop.xlane.xlu0 %443 }
 0x3d4   :  { %v448_v23 = vsub.f32 %v440_v10, %v444_v22 }
 0x3d5   :  { %v447_v24 = vpop.xlane.xlu1 %446 }
 0x3d6   :  { %v450_v25 = vmul.f32 1.442695, %v448_v23  ;;  %v449_v26 = vsub.f32 %v441_v15, %v447_v24 }
 0x3d8   :  { %1952 = vpow2.f32 %v450_v25  ;;  %v452_v27 = vmul.f32 1.442695, %v449_v26 }
 0x3d9   :  { %v618_v32 = vpop.permute.xlu1 %617 }
 0x3da   :  { %1954 = vpow2.f32 %v452_v27  ;;  %v623_v43 = vsel %vm341_vm2, %v618_v32, 0 }
 0x3e2   :  { %v1953_v28 = vpop.eup %1952 }
 0x3e3   :  { %v454_v29 = vsel %vm341_vm2, %v1953_v28, 0.0 }
 0x3e4   :  { %v1955_v30 = vpop.eup %1954  ;;  %455 = vadd.xlane.f32.xlu0 %v454_v29 }
 0x3e5   :  { %v457_v31 = vsel %vm341_vm2, %v1955_v30, 0.0 }
 0x3e6   :  { %458 = vadd.xlane.f32.xlu1 %v457_v31  ;;  %v790_v31 = vld [vmem:[#allocation7 + $0x4] sm:$0xf] }
 0x3f7   :  { %562 = vrot.lane.b32.xlu1 %v2331_v57, %s2117_s3 }
 0x3fa   :  { %565 = vrot.lane.b32.xlu0 %v2319_v47, %s2117_s3 }
 0x3fb   :  { %614 = vrot.lane.b32.xlu1 %v2335_v59, %s2117_s3 }
 0x471   :  { %v456_v33 = vpop.xlane.xlu0 %455 }
 0x472   :  { %1956 = vrcp.f32 %v456_v33 }
 0x473   :  { %v459_v34 = vpop.xlane.xlu1 %458 }
 0x474   :  { %1958 = vrcp.f32 %v459_v34  ;;  %v795_v34 = vsel %vm469_vm3, %v790_v31, 0 }
 0x475   :  { %v566_v38 = vpop.permute.xlu0 %565 }
 0x476   :  { %v571_v41 = vsel %vm341_vm2, %v566_v38, 0 }
 0x477   :  { %v563_v44 = vpop.permute.xlu1 %562 }
 0x47b   :  { %v615_v45 = vpop.permute.xlu1 %614 }
 0x47c   :  { %v1957_v35 = vpop.eup %1956 }
 0x47d   :  { %v462_v36 = vmul.f32 %v1957_v35, %v1953_v28 }
 0x47e   :  { %v1959_v37 = vpop.eup %1958 }
 0x47f   :  { %v463_v39 = vmul.f32 %v1959_v37, %v1955_v30  ;;  %v464_v40 = vpack.c.bf16 %v462_v36, %v462_v36  ;;  %v560_v36 = vld [vmem:[#allocation7] sm:$0xf] }
 0x481   :  { %1794 = vmatmul.mubr.msk.bf16.vlgmr.msra.gmra.mrb[12].mxu1 %vm341_vm2, %v464_v40  ;;  %v465_v42 = vpack.c.bf16 %v463_v39, %v463_v39  ;;  %v842_v39 = vsel %vm469_vm3, %v560_v36, 0 }
 0x482   :  { %1804 = vmatpush3.bf16.xpose.msra.mxu1 %v571_v41  ;;  %1805 = vmatprep.mubr.msk.bf16.mxu1 %vm2115_vm1, %v2114_v16 }
 0x483   :  { %1800 = vmatmul.mubr.msk.bf16.vlgmr.msra.gmra.mrb[8].mxu0 %vm341_vm2, %v465_v42  ;;  %1815 = vmatprep.subr.bf16.mxu1 %v2114_v16 }
 0x484   :  { %1810 = vmatpush3.bf16.xpose.msra.mxu0 %v623_v43  ;;  %1811 = vmatprep.mubr.msk.bf16.mxu0 %vm2115_vm1, %v2114_v16 }
 0x485   :  { %1821 = vmatprep.subr.bf16.mxu0 %v2114_v16 }
 0x489   :  { %1806 = vmatmul.mubr.msk.bf16.vlgmr.msra.gmra.mrb[16].mxu1 %vm341_vm2, %v563_v44 }
 0x48a   :  { %1817 = vmatprep.mubr.msk.bf16.mxu1 %vm2115_vm1, %v2114_v16 }
 0x48b   :  { %1812 = vmatmul.mubr.msk.bf16.vlgmr.msra.gmra.mrb[12].mxu0 %vm341_vm2, %v615_v45 }
 0x48c   :  { %1823 = vmatprep.mubr.msk.bf16.mxu0 %vm2115_vm1, %v2114_v16 }
 0x554   :  { %v2391_v46 = vpop.f32.mrb[12].mxu1 }
 0x555   :  { %v1795_v48 = vpop.f32.mrb[13].mxu1 }
 0x556   :  { %v510_v49 = vpop.f32.mrb[14].mxu1  ;;  %v2393_v51 = vpop.f32.mrb[8].mxu0 }
 0x557   :  { %v559_v52 = vpack.c.bf16 %v2393_v51, %v2391_v46  ;;  %v1796_v53 = vpop.f32.mrb[15].mxu1  ;;  %v1801_v54 = vpop.f32.mrb[9].mxu0 }
 0x558   :  { %v556_v56 = vpop.f32.mrb[10].mxu0 }
 0x559   :  { %v1802_v60 = vpop.f32.mrb[11].mxu0 }
 0x55c   :  { %v607_v61 = vpop.f32.mrb[16].mxu1 }
 0x55d   :  { %v665_v62 = vsel %vm2351_vm6, -inf, %v607_v61  ;;  %v1807_v63 = vpop.f32.mrb[17].mxu1 }
 0x55e   :  { %v610_v2 = vpop.f32.mrb[18].mxu1  ;;  %v659_v3 = vpop.f32.mrb[12].mxu0  ;;  %v667_v4 = vsel %vm341_vm2, %v665_v62, -inf }
 0x55f   :  { %v666_v5 = vsel %vm2355_vm7, -inf, %v659_v3  ;;  %v1813_v6 = vpop.f32.mrb[13].mxu0  ;;  %668 = vmax.xlane.f32.xlu0 %v667_v4  ;;  %v1808_v8 = vpop.f32.mrb[19].mxu1 }
 0x560   :  { %v662_v10 = vpop.f32.mrb[14].mxu0  ;;  %v670_v11 = vsel %vm341_vm2, %v666_v5, -inf }
 0x561   :  { %671 = vmax.xlane.f32.xlu1 %v670_v11  ;;  %v1814_v12 = vpop.f32.mrb[15].mxu0 }
 0x572   :  { %741 = vrot.lane.b32.xlu1 %v2333_v58, %s2117_s3 }
 0x576   :  { %887 = vrot.lane.b32.xlu1 %v2319_v47, %s2118_s7 }
 0x57a   :  { %937 = vrot.lane.b32.xlu1 %v2321_v50, %s2118_s7 }
 0x57e   :  { %935 = vrot.lane.b32.xlu1 %v2335_v59, %s2118_s7 }
 0x5ec   :  { %v669_v13 = vpop.xlane.xlu0 %668 }
 0x5ed   :  { %v673_v14 = vsub.f32 %v665_v62, %v669_v13 }
 0x5ee   :  { %v672_v15 = vpop.xlane.xlu1 %671 }
 0x5ef   :  { %v675_v17 = vmul.f32 1.442695, %v673_v14  ;;  %v674_v18 = vsub.f32 %v666_v5, %v672_v15 }
 0x5f1   :  { %1960 = vpow2.f32 %v675_v17  ;;  %v677_v19 = vmul.f32 1.442695, %v674_v18 }
 0x5f2   :  { %v742_v20 = vpop.permute.xlu1 %741 }
 0x5f3   :  { %1962 = vpow2.f32 %v677_v19  ;;  %v747_v21 = vsel %vm469_vm3, %v742_v20, 0 }
 0x5f4   :  { %1822 = vmatpush3.bf16.msra.mxu0 %v747_v21 }
 0x5f5   :  { %1833 = vmatprep.subr.bf16.mxu0 %v2114_v16 }
 0x5f6   :  { %v888_v40 = vpop.permute.xlu1 %887 }
 0x5f7   :  { %v893_v54 = vsel %vm341_vm2, %v888_v40, 0 }
 0x5fa   :  { %v938_v41 = vpop.permute.xlu1 %937 }
 0x5fb   :  { %v1961_v22 = vpop.eup %1960  ;;  %v943_v42 = vsel %vm341_vm2, %v938_v41, 0 }
 0x5fc   :  { %v679_v23 = vsel %vm341_vm2, %v1961_v22, 0.0 }
 0x5fd   :  { %v1963_v24 = vpop.eup %1962  ;;  %680 = vadd.xlane.f32.xlu0 %v679_v23 }
 0x5fe   :  { %v682_v25 = vsel %vm341_vm2, %v1963_v24, 0.0  ;;  %v936_v43 = vpop.permute.xlu1 %935 }
 0x601   :  { %683 = vadd.xlane.f32.xlu0 %v682_v25 }
 0x617   :  { %692 = vrot.lane.b32.xlu0 %v2328_v55, %s2117_s3 }
 0x61b   :  { %885 = vrot.lane.b32.xlu0 %v2331_v57, %s2118_s7 }
 0x68a   :  { %v681_v26 = vpop.xlane.xlu0 %680 }
 0x68b   :  { %1964 = vrcp.f32 %v681_v26 }
 0x68e   :  { %v684_v27 = vpop.xlane.xlu0 %683 }
 0x68f   :  { %1966 = vrcp.f32 %v684_v27 }
 0x692   :  { %v693_v28 = vpop.permute.xlu0 %692 }
 0x693   :  { %v698_v29 = vsel %vm469_vm3, %v693_v28, 0 }
 0x694   :  { %1816 = vmatpush3.bf16.msra.mxu1 %v698_v29 }
 0x695   :  { %v1965_v30 = vpop.eup %1964  ;;  %1827 = vmatprep.subr.bf16.mxu1 %v2114_v16 }
 0x696   :  { %v687_v32 = vmul.f32 %v1965_v30, %v1961_v22  ;;  %v886_v62 = vpop.permute.xlu0 %885 }
 0x698   :  { %v689_v33 = vpack.c.bf16 %v687_v32, %v687_v32 }
 0x699   :  { %v1967_v35 = vpop.eup %1966 }
 0x69a   :  { %v688_v37 = vmul.f32 %v1967_v35, %v1963_v24  ;;  %1818 = vmatmul.mubr.msk.bf16.vlgmr.msra.gmra.mrb[20].mxu1 %vm341_vm2, %v689_v33 }
 0x69b   :  { %1828 = vmatpush3.bf16.msra.mxu1 %v795_v34  ;;  %1829 = vmatprep.mubr.msk.bf16.mxu1 %vm2115_vm1, %v2114_v16 }
 0x69c   :  { %v690_v38 = vpack.c.bf16 %v688_v37, %v688_v37  ;;  %1839 = vmatprep.subr.bf16.mxu1 %v2114_v16 }
 0x69e   :  { %1824 = vmatmul.mubr.msk.bf16.vlgmr.msra.gmra.mrb[16].mxu0 %vm341_vm2, %v690_v38 }
 0x69f   :  { %1834 = vmatpush3.bf16.msra.mxu0 %v842_v39  ;;  %1835 = vmatprep.mubr.msk.bf16.mxu0 %vm2115_vm1, %v2114_v16 }
 0x6a0   :  { %1845 = vmatprep.subr.bf16.mxu0 %v2114_v16 }
 0x6a6   :  { %1836 = vmatmul.mubr.msk.bf16.vlgmr.msra.gmra.mrb[20].mxu0 %vm341_vm2, %v559_v52 }
 0x6a7   :  { %1847 = vmatprep.mubr.msk.bf16.mxu0 %vm2115_vm1, %v2114_v16 }
 0x6a8   :  { %1846 = vmatpush3.bf16.xpose.msra.mxu0 %v943_v42 }
 0x6a9   :  { %1857 = vmatprep.subr.bf16.mxu0 %v2114_v16 }
 0x6af   :  { %1848 = vmatmul.mubr.msk.bf16.vlgmr.msra.gmra.mrb[24].mxu0 %vm341_vm2, %v936_v43 }
 0x6b0   :  { %1859 = vmatprep.mubr.msk.bf16.mxu0 %vm2115_vm1, %v2114_v16 }
 0x76d   :  { %v734_v44 = vpop.f32.mrb[20].mxu1 }
 0x76e   :  { %v1819_v45 = vpop.f32.mrb[21].mxu1 }
 0x76f   :  { %v737_v48 = vpop.f32.mrb[22].mxu1 }
 0x770   :  { %v1820_v46 = vpop.f32.mrb[23].mxu1 }
 0x771   :  { %v783_v49 = vpop.f32.mrb[16].mxu0 }
 0x772   :  { %v789_v51 = vpack.c.bf16 %v783_v49, %v734_v44  ;;  %v1825_v52 = vpop.f32.mrb[17].mxu0 }
 0x773   :  { %v786_v53 = vpop.f32.mrb[18].mxu0 }
 0x774   :  { %v1826_v56 = vpop.f32.mrb[19].mxu0  ;;  %1830 = vmatmul.mubr.msk.bf16.vlgmr.msra.gmra.mrb[24].mxu1 %vm341_vm2, %v789_v51  ;;  %v1108_v51 = vld [vmem:[#allocation7 + $0x8] sm:$0xf] }
 0x775   :  { %1840 = vmatpush3.bf16.xpose.msra.mxu1 %v893_v54  ;;  %1841 = vmatprep.mubr.msk.bf16.mxu1 %vm2115_vm1, %v2114_v16  ;;  %v1113_v52 = vsel %vm469_vm3, %v1108_v51, 0 }
 0x776   :  { %1851 = vmatprep.subr.bf16.mxu1 %v2114_v16 }
 0x779   :  { %v878_v60 = vpop.f32.mrb[20].mxu0 }
 0x77a   :  { %v1837_v61 = vpop.f32.mrb[21].mxu0 }
 0x77b   :  { %v881_v63 = vpop.f32.mrb[22].mxu0 }
 0x77c   :  { %v1838_v2 = vpop.f32.mrb[23].mxu0  ;;  %1842 = vmatmul.mubr.msk.bf16.vlgmr.msra.gmra.mrb[28].mxu1 %vm341_vm2, %v886_v62 }
 0x77d   :  { %1853 = vmatprep.mubr.msk.bf16.mxu1 %vm2115_vm1, %v2114_v16 }
 0x782   :  { %v979_v3 = vpop.f32.mrb[24].mxu0 }
 0x783   :  { %v986_v4 = vsel %vm2355_vm7, -inf, %v979_v3  ;;  %v1849_v5 = vpop.f32.mrb[25].mxu0 }
 0x784   :  { %v982_v6 = vpop.f32.mrb[26].mxu0  ;;  %v990_v8 = vsel %vm341_vm2, %v986_v4, -inf }
 0x785   :  { %991 = vmax.xlane.f32.xlu1 %v990_v8  ;;  %v1850_v10 = vpop.f32.mrb[27].mxu0 }
 0x796   :  { %1059 = vrot.lane.b32.xlu1 %v2333_v58, %s2118_s7 }
 0x79a   :  { %1160 = vrot.lane.b32.xlu1 %v2319_v47, %s2119_s26 }
 0x79e   :  { %1210 = vrot.lane.b32.xlu1 %v2321_v50, %s2119_s26 }
 0x7a2   :  { %1208 = vrot.lane.b32.xlu1 %v2335_v59, %s2119_s26 }
 0x812   :  { %v992_v11 = vpop.xlane.xlu1 %991 }
 0x813   :  { %v994_v14 = vsub.f32 %v986_v4, %v992_v11 }
 0x815   :  { %v997_v15 = vmul.f32 1.442695, %v994_v14 }
 0x816   :  { %v1060_v12 = vpop.permute.xlu1 %1059 }
 0x817   :  { %v1065_v13 = vsel %vm469_vm3, %v1060_v12, 0  ;;  %1968 = vpow2.f32 %v997_v15 }
 0x818   :  { %1858 = vmatpush3.bf16.msra.mxu0 %v1065_v13 }
 0x819   :  { %1869 = vmatprep.subr.bf16.mxu0 %v2114_v16 }
 0x81a   :  { %v1161_v36 = vpop.permute.xlu1 %1160 }
 0x81b   :  { %v1166_v38 = vsel %vm341_vm2, %v1161_v36, 0 }
 0x821   :  { %v1969_v25 = vpop.eup %1968 }
 0x822   :  { %v1002_v27 = vsel %vm341_vm2, %v1969_v25, 0.0 }
 0x847   :  { %v831_v17 = vpop.f32.mrb[24].mxu1 }
 0x848   :  { %v2463_v18 = vadd.f32 %v878_v60, %v831_v17  ;;  %v1831_v47 = vpop.f32.mrb[25].mxu1 }
 0x849   :  { %v834_v19 = vpop.f32.mrb[26].mxu1 }
 0x84a   :  { %v2465_v20 = vadd.f32 %v881_v63, %v834_v19  ;;  %v1832_v50 = vpop.f32.mrb[27].mxu1  ;;  %v1211_v63 = vpop.permute.xlu1 %1210 }
 0x84b   :  { %v1216_v6 = vsel %vm341_vm2, %v1211_v63, 0 }
 0x84e   :  { %v1209_v7 = vpop.permute.xlu1 %1208 }
 0x84f   :  { %v929_v21 = vpop.f32.mrb[28].mxu1 }
 0x850   :  { %v985_v59 = vsel %vm2351_vm6, -inf, %v929_v21  ;;  %v1843_v22 = vpop.f32.mrb[29].mxu1 }
 0x851   :  { %v932_v23 = vpop.f32.mrb[30].mxu1  ;;  %v987_v24 = vsel %vm341_vm2, %v985_v59, -inf }
 0x852   :  { %988 = vmax.xlane.f32.xlu0 %v987_v24  ;;  %v1844_v26 = vpop.f32.mrb[31].mxu1 }
 0x856   :  { %1003 = vadd.xlane.f32.xlu0 %v1002_v27 }
 0x8df   :  { %v989_v28 = vpop.xlane.xlu0 %988 }
 0x8e0   :  { %v993_v29 = vsub.f32 %v985_v59, %v989_v28 }
 0x8e2   :  { %v995_v30 = vmul.f32 1.442695, %v993_v29 }
 0x8e3   :  { %v1004_v31 = vpop.xlane.xlu0 %1003 }
 0x8e4   :  { %1970 = vpow2.f32 %v995_v30 }
 0x8e5   :  { %1972 = vrcp.f32 %v1004_v31 }
 0x8ee   :  { %v1971_v32 = vpop.eup %1970 }
 0x8ef   :  { %v1973_v33 = vpop.eup %1972  ;;  %v999_v34 = vsel %vm341_vm2, %v1971_v32, 0.0 }
 0x8f0   :  { %v1008_v35 = vmul.f32 %v1973_v33, %v1969_v25  ;;  %1000 = vadd.xlane.f32.xlu0 %v999_v34 }
 0x8f2   :  { %v1010_v37 = vpack.c.bf16 %v1008_v35, %v1008_v35 }
 0x8f4   :  { %1860 = vmatmul.mubr.msk.bf16.vlgmr.msra.gmra.mrb[28].mxu0 %vm341_vm2, %v1010_v37 }
 0x8f5   :  { %1870 = vmatpush3.bf16.xpose.msra.mxu0 %v1166_v38  ;;  %1871 = vmatprep.mubr.msk.bf16.mxu0 %vm2115_vm1, %v2114_v16 }
 0x8f6   :  { %1881 = vmatprep.subr.bf16.mxu0 %v2114_v16 }
 0x906   :  { %1011 = vrot.lane.b32.xlu0 %v2328_v55, %s2118_s7 }
 0x90a   :  { %1158 = vrot.lane.b32.xlu0 %v2331_v57, %s2119_s26 }
 0x97d   :  { %v1001_v39 = vpop.xlane.xlu0 %1000 }
 0x97e   :  { %1974 = vrcp.f32 %v1001_v39  ;;  %v1381_v39 = vld [vmem:[#allocation7 + $0xc] sm:$0xf] }
 0x981   :  { %v1012_v40 = vpop.permute.xlu0 %1011 }
 0x982   :  { %v1017_v41 = vsel %vm469_vm3, %v1012_v40, 0  ;;  %v1386_v40 = vsel %vm469_vm3, %v1381_v39, 0 }
 0x983   :  { %1852 = vmatpush3.bf16.msra.mxu1 %v1017_v41 }
 0x984   :  { %1863 = vmatprep.subr.bf16.mxu1 %v2114_v16 }
 0x985   :  { %v1159_v42 = vpop.permute.xlu0 %1158 }
 0x986   :  { %1872 = vmatmul.mubr.msk.bf16.vlgmr.msra.gmra.mrb[32].mxu0 %vm341_vm2, %v1159_v42 }
 0x987   :  { %1883 = vmatprep.mubr.msk.bf16.mxu0 %vm2115_vm1, %v2114_v16 }
 0x988   :  { %v1975_v43 = vpop.eup %1974 }
 0x989   :  { %v1007_v44 = vmul.f32 %v1975_v43, %v1971_v32 }
 0x98b   :  { %v1009_v45 = vpack.c.bf16 %v1007_v44, %v1007_v44 }
 0x98d   :  { %1854 = vmatmul.mubr.msk.bf16.vlgmr.msra.gmra.mrb[32].mxu1 %vm341_vm2, %v1009_v45 }
 0x98e   :  { %1865 = vmatprep.mubr.msk.bf16.mxu1 %vm2115_vm1, %v2114_v16  ;;  %1864 = vmatpush3.bf16.msra.mxu1 %v1113_v52 }
 0x98f   :  { %1875 = vmatprep.subr.bf16.mxu1 %v2114_v16 }
 0x9c7   :  { %v1101_v57 = vpop.f32.mrb[28].mxu0 }
 0x9c8   :  { %v1861_v48 = vpop.f32.mrb[29].mxu0 }
 0x9c9   :  { %v1104_v46 = vpop.f32.mrb[30].mxu0 }
 0x9ca   :  { %v1862_v49 = vpop.f32.mrb[31].mxu0 }
 0xa59   :  { %v1202_v53 = vpop.f32.mrb[32].mxu0 }
 0xa5a   :  { %v1258_v54 = vsel %vm2351_vm6, -inf, %v1202_v53  ;;  %v1873_v56 = vpop.f32.mrb[33].mxu0 }
 0xa5b   :  { %v1205_v60 = vpop.f32.mrb[34].mxu0  ;;  %v1260_v61 = vsel %vm341_vm2, %v1258_v54, -inf }
 0xa5c   :  { %1261 = vmax.xlane.f32.xlu0 %v1260_v61  ;;  %v1874_v62 = vpop.f32.mrb[35].mxu0 }
 0xa60   :  { %v1053_v2 = vpop.f32.mrb[32].mxu1 }
 0xa61   :  { %v1107_v3 = vpack.c.bf16 %v1101_v57, %v1053_v2  ;;  %v1855_v4 = vpop.f32.mrb[33].mxu1 }
 0xa62   :  { %v1056_v5 = vpop.f32.mrb[34].mxu1 }
 0xa63   :  { %v1856_v8 = vpop.f32.mrb[35].mxu1  ;;  %1866 = vmatmul.mubr.msk.bf16.vlgmr.msra.gmra.mrb[36].mxu1 %vm341_vm2, %v1107_v3 }
 0xa64   :  { %1876 = vmatpush3.bf16.xpose.msra.mxu1 %v1216_v6  ;;  %1877 = vmatprep.mubr.msk.bf16.mxu1 %vm2115_vm1, %v2114_v16 }
 0xa65   :  { %1887 = vmatprep.subr.bf16.mxu1 %v2114_v16 }
 0xa6b   :  { %1878 = vmatmul.mubr.msk.bf16.vlgmr.msra.gmra.mrb[40].mxu1 %vm341_vm2, %v1209_v7 }
 0xa6c   :  { %1889 = vmatprep.mubr.msk.bf16.mxu1 %vm2115_vm1, %v2114_v16 }
 0xae9   :  { %v1262_v10 = vpop.xlane.xlu0 %1261 }
 0xaea   :  { %v1266_v11 = vsub.f32 %v1258_v54, %v1262_v10 }
 0xaec   :  { %v1268_v12 = vmul.f32 1.442695, %v1266_v11 }
 0xaee   :  { %1976 = vpow2.f32 %v1268_v12  ;;  %v1942_v12 = vld [vmem:[#allocation8] sm:$0xff]  }
 0xaf8   :  { %v1977_v13 = vpop.eup %1976 }
 0xaf9   :  { %v1272_v14 = vsel %vm341_vm2, %v1977_v13, 0.0 }
 0xafa   :  { %1273 = vadd.xlane.f32.xlu0 %v1272_v14  ;;  %v1944_v14 = vld [vmem:[%s2597_s10] sm:$0xff]  }
 0xb36   :  { %v1149_v15 = vpop.f32.mrb[36].mxu1 }
 0xb37   :  { %v1156_v17 = vadd.f32 %v1149_v15, %v2463_v18  ;;  %v1867_v47 = vpop.f32.mrb[37].mxu1  ;;  %v1945_v15 = vld [vmem:[%s2597_s10 + $0x8] sm:$0xff]  }
 0xb38   :  { %v1152_v19 = vpop.f32.mrb[38].mxu1 }
 0xb39   :  { %v1157_v50 = vadd.f32 %v1152_v19, %v2465_v20  ;;  %v1868_v21 = vpop.f32.mrb[39].mxu1 }
 0xb3e   :  { %v1252_v59 = vpop.f32.mrb[40].mxu1 }
 0xb3f   :  { %v1259_v22 = vsel %vm2355_vm7, -inf, %v1252_v59  ;;  %v1879_v23 = vpop.f32.mrb[41].mxu1 }
 0xb40   :  { %v1255_v24 = vpop.f32.mrb[42].mxu1  ;;  %v1263_v25 = vsel %vm341_vm2, %v1259_v22, -inf  ;;  %v1686_v23 = vld [vmem:[%s2599_s12] ss:$0 sm:$0xff] }
 0xb41   :  { %1264 = vmax.xlane.f32.xlu1 %v1263_v25  ;;  %v1880_v26 = vpop.f32.mrb[43].mxu1 }
 0xb52   :  { %1332 = vrot.lane.b32.xlu1 %v2333_v58, %s2119_s26 }
 0xb87   :  { %v1274_v31 = vpop.xlane.xlu0 %1273 }
 0xbce   :  { %v1265_v27 = vpop.xlane.xlu1 %1264 }
 0xbcf   :  { %v1267_v18 = vsub.f32 %v1259_v22, %v1265_v27 }
 0xbd1   :  { %v1270_v28 = vmul.f32 1.442695, %v1267_v18  ;;  %v1687_v18 = vld [vmem:[%s2600_s13] ss:$0 sm:$0xff] }
 0xbd2   :  { %v1333_v29 = vpop.permute.xlu1 %1332 }
 0xbd3   :  { %1978 = vpow2.f32 %v1270_v28  ;;  %v1338_v20 = vsel %vm469_vm3, %v1333_v29, 0 }
 0xbd4   :  { %1888 = vmatpush3.bf16.msra.mxu1 %v1338_v20  ;;  %1980 = vrcp.f32 %v1274_v31  ;;  %v1947_v31 = vld [vmem:[%s2597_s10 + $0x18] sm:$0xff]  }
 0xbd5   :  { %1899 = vmatprep.subr.bf16.mxu1 %v2114_v16 }
 0xbdd   :  { %v1979_v9 = vpop.eup %1978 }
 0xbde   :  { %v1275_v30 = vsel %vm341_vm2, %v1979_v9, 0.0  ;;  %v1981_v58 = vpop.eup %1980 }
 0xbdf   :  { %1276 = vadd.xlane.f32.xlu0 %v1275_v30  ;;  %v1280_v33 = vmul.f32 %v1981_v58, %v1977_v13  ;;  %v1943_v13 = vld [vmem:[#allocation8 + $0x8] sm:$0xff]   ;;  %v1688_v58 = vld [vmem:[%s2596_s9] ss:$0 sm:$0xff]  ;;  %s2120_s9 = smov [#allocation10]  }
 0xbe0   :  { %v1946_v30 = vld [vmem:[%s2597_s10 + $0x10] sm:$0xff]   ;;  %s1641_s10 = sshll.u32 %s2120_s9, 4  ;;  %s1642_s10 = int_to_ptr.vmem [resolvable:$true] %s1641_s10 }
 0xbe1   :  { %v1282_v36 = vpack.c.bf16 %v1280_v33, %v1280_v33  ;;  %s2076_s2 = scalar_lea.vmem %s1642_s10, 256  ;;  %p2081_p5 = scmp.lt.s32.totalorder %s1642_s10, %s1642_s10 }
 0xbe2   :  { %p2077_p4 = scmp.ne.s32.totalorder %s1642_s10, %s2076_s2  ;;  %p2082_p6 = scmp.lt.s32.totalorder %s2076_s2, %s2076_s2 }
 0xbe4   :  { %p2083_p7 = por %p2082_p6, %p2081_p5 }
 0xbe6   :  { %p2084_p8 = pnand %p2083_p7, %p2077_p4 }
 0xbf5   :  { %1284 = vrot.lane.b32.xlu0 %v2328_v55, %s2119_s26 }
 0xc6c   :  { %v1277_v32 = vpop.xlane.xlu0 %1276 }
 0xc6d   :  { %1982 = vrcp.f32 %v1277_v32 }
 0xc70   :  { %v1285_v34 = vpop.permute.xlu0 %1284 }
 0xc71   :  { %v1290_v35 = vsel %vm469_vm3, %v1285_v34, 0 }
 0xc72   :  { %1882 = vmatpush3.bf16.msra.mxu0 %v1290_v35 }
 0xc73   :  { %1893 = vmatprep.subr.bf16.mxu0 %v2114_v16 }
 0xc75   :  { %1884 = vmatmul.mubr.msk.bf16.vlgmr.msra.gmra.mrb[36].mxu0 %vm341_vm2, %v1282_v36 }
 0xc76   :  { %1895 = vmatprep.mubr.msk.bf16.mxu0 %vm2115_vm1, %v2114_v16  ;;  %1894 = vmatpush3.bf16.msra.mxu0 %v1386_v40 }
 0xc77   :  { %v1983_v37 = vpop.eup %1982  ;;  %1907 = vmatprep.subr.bf16.mxu0 %v2114_v16 }
 0xc78   :  { %v1281_v55 = vmul.f32 %v1983_v37, %v1979_v9 }
 0xc7a   :  { %v1283_v38 = vpack.c.bf16 %v1281_v55, %v1281_v55 }
 0xc7c   :  { %1890 = vmatmul.mubr.msk.bf16.vlgmr.msra.gmra.mrb[44].mxu1 %vm341_vm2, %v1283_v38 }
 0xc7d   :  { %1903 = vmatprep.mubr.msk.bf16.mxu1 %vm2115_vm1, %v2114_v16  ;;  %1900 = vmatpush3.bf16.msra.mxu1 %v1942_v12 }
 0xc7e   :  { %1901 = vmatprep.subr.bf16.mxu1 %v2114_v16 }
 0xc81   :  { %1902 = vmatpush3.bf16.msra.mxu1 %v1943_v13 }
 0xd48   :  { %v1326_v41 = vpop.f32.mrb[36].mxu0 }
 0xd49   :  { %v1885_v42 = vpop.f32.mrb[37].mxu0 }
 0xd4a   :  { %v1329_v43 = vpop.f32.mrb[38].mxu0 }
 0xd4b   :  { %v1886_v44 = vpop.f32.mrb[39].mxu0 }
 0xd4f   :  { %v1374_v45 = vpop.f32.mrb[44].mxu1 }
 0xd50   :  { %v1380_v57 = vpack.c.bf16 %v1374_v45, %v1326_v41  ;;  %v1891_v48 = vpop.f32.mrb[45].mxu1 }
 0xd51   :  { %v1377_v46 = vpop.f32.mrb[46].mxu1 }
 0xd52   :  { %v1892_v49 = vpop.f32.mrb[47].mxu1  ;;  %1896 = vmatmul.mubr.msk.bf16.vlgmr.msra.gmra.mrb[40].mxu0 %vm341_vm2, %v1380_v57 }
 0xd53   :  { %1915 = vmatprep.mubr.msk.bf16.mxu0 %vm2115_vm1, %v2114_v16  ;;  %1908 = vmatpush3.bf16.msra.mxu0 %v1944_v14 }
 0xd54   :  { %1909 = vmatprep.subr.bf16.mxu0 %v2114_v16 }
 0xd57   :  { %1910 = vmatpush3.bf16.msra.mxu0 %v1945_v15 }
 0xd58   :  { %1911 = vmatprep.subr.bf16.mxu0 %v2114_v16 }
 0xd5b   :  { %1912 = vmatpush3.bf16.msra.mxu0 %v1946_v30 }
 0xd5c   :  { %1913 = vmatprep.subr.bf16.mxu0 %v2114_v16  ;;  %v1692_v16 = vld [vmem:[%s2598_s11] ss:$0 sm:$0xff] }
 0xd5f   :  { %1914 = vmatpush3.bf16.msra.mxu0 %v1947_v31 }
 0xe25   :  { %v1422_v51 = vpop.f32.mrb[40].mxu0 }
 0xe26   :  { %v1429_v52 = vadd.f32 %v1422_v51, %v1156_v17  ;;  %v1897_v53 = vpop.f32.mrb[41].mxu0 }
 0xe27   :  { %v1425_v54 = vpop.f32.mrb[42].mxu0 }
 0xe28   :  { %v2529_v56 = vadd.f32 %v1429_v52, %v2265_v0  ;;  %v1430_v60 = vadd.f32 %v1425_v54, %v1157_v50  ;;  %v1898_v61 = vpop.f32.mrb[43].mxu0 }
 0xe2a   :  { %v2532_v62 = vadd.f32 %v1430_v60, %v2270_v1  ;;  %v1435_v63 = vsel %vm114_vm0, %v2529_v56, 0.0 }
 0xe2b   :  { %1436 = vadd.xlane.f32.xlu1 %v1435_v63 }
 0xe2c   :  { %v1438_v2 = vsel %vm114_vm0, %v2532_v62, 0.0 }
 0xe2d   :  { %1439 = vadd.xlane.f32.xlu0 %v1438_v2 }
 0xeb8   :  { %v1437_v3 = vpop.xlane.xlu1 %1436 }
 0xeb9   :  { %v1441_v4 = vmul.f32 0.03125, %v1437_v3 }
 0xeba   :  { %v1440_v5 = vpop.xlane.xlu0 %1439 }
 0xebb   :  { %v1443_v6 = vsub.f32 %v2529_v56, %v1441_v4  ;;  %v1442_v0 = vmul.f32 0.03125, %v1440_v5 }
 0xebd   :  { %v1444_v8 = vsub.f32 %v2532_v62, %v1442_v0  ;;  %v1445_v7 = vmul.f32 %v1443_v6, %v1443_v6 }
 0xebf   :  { %v1447_v1 = vsel %vm114_vm0, %v1445_v7, 0.0  ;;  %v1446_v10 = vmul.f32 %v1444_v8, %v1444_v8 }
 0xec0   :  { %1448 = vadd.xlane.f32.xlu0 %v1447_v1 }
 0xec1   :  { %v1450_v11 = vsel %vm114_vm0, %v1446_v10, 0.0 }
 0xec2   :  { %1451 = vadd.xlane.f32.xlu1 %v1450_v11 }
 0xf4d   :  { %v1449_v17 = vpop.xlane.xlu0 %1448 }
 0xf4e   :  { %v1453_v47 = vmul.f32 0.03125, %v1449_v17 }
 0xf4f   :  { %v1452_v19 = vpop.xlane.xlu1 %1451 }
 0xf50   :  { %v1455_v50 = vadd.f32 1e-05, %v1453_v47  ;;  %v1454_v21 = vmul.f32 0.03125, %v1452_v19 }
 0xf52   :  { %1984 = vrsqrt.f32 %v1455_v50  ;;  %v1456_v59 = vadd.f32 1e-05, %v1454_v21 }
 0xf54   :  { %1986 = vrsqrt.f32 %v1456_v59 }
 0xf5c   :  { %v1985_v22 = vpop.eup %1984 }
 0xf5d   :  { %v1459_v24 = vmul.f32 %v1985_v22, %v1443_v6 }
 0xf5e   :  { %v1987_v25 = vpop.eup %1986 }
 0xf5f   :  { %v1467_v26 = vmul.f32 %v1686_v23, %v1459_v24  ;;  %v1460_v27 = vmul.f32 %v1987_v25, %v1444_v8 }
 0xf61   :  { %v1468_v28 = vmul.f32 %v1686_v23, %v1460_v27  ;;  %v1475_v29 = vadd.f32 %v1687_v18, %v1467_v26 }
 0xf63   :  { %v1476_v20 = vadd.f32 %v1687_v18, %v1468_v28 }
 0xf65   :  { %v1477_v9 = vpack.c.bf16 %v1476_v20, %v1475_v29 }
 0xf67   :  { %1904 = vmatmul.mubr.msk.bf16.vlgmr.msra.gmra.mrb[48].mxu1 %vm114_vm0, %v1477_v9 }
0x103a   :  { %v1538_v32 = vpop.f32.mrb[48].mxu1 }
0x103b   :  { %v1539_v33 = vadd.f32 %v1688_v58, %v1538_v32  ;;  %v1905_v34 = vpop.f32.mrb[49].mxu1 }
0x103c   :  { %v1541_v35 = vpop.f32.mrb[50].mxu1 }
0x103d   :  { %v1542_v36 = vadd.f32 %v1688_v58, %v1541_v35  ;;  %v1906_v37 = vpop.f32.mrb[51].mxu1  ;;  %v1545_v55 = vmax.f32 %v1539_v33, 0.0 }
0x103f   :  { %v1546_v38 = vmax.f32 %v1542_v36, 0.0 }
0x1041   :  { %v1547_v39 = vpack.c.bf16 %v1546_v38, %v1545_v55 }
0x1043   :  { %1916 = vmatmul.mubr.msk.bf16.vlgmr.msra.gmra.mrb[44].mxu0 %vm1587_vm8, %v1547_v39 }
0x1116   :  { %v1625_v40 = vpop.f32.mrb[44].mxu0 }
0x1117   :  { %v1626_v41 = vadd.f32 %v1692_v16, %v1625_v40  ;;  %v1917_v42 = vpop.f32.mrb[45].mxu0 }
0x1118   :  { %v1628_v43 = vpop.f32.mrb[46].mxu0 }
0x1119   :  { %v1632_v44 = vadd.f32 %v1626_v41, %v2529_v56  ;;  %v1629_v45 = vadd.f32 %v1692_v16, %v1628_v43  ;;  %v1918_v57 = vpop.f32.mrb[47].mxu0 }
0x111b   :  { %1634 = vst.msk [vmem:[#allocation10] sm:$0xff] %vm114_vm0, %v1632_v44  ;;  %v1633_v48 = vadd.f32 %v1629_v45, %v2532_v62 }
0x111d   :  { %1635 = vst.msk [vmem:[#allocation10 + $0x8] sm:$0xff] %vm114_vm0, %v1633_v48 }
0x111e   :  { %2087 = shalt.err (!%p2084_p8)
}
0x111f   :  { %s2088_s4 = scalar_lea.hbm %s2601_s14, 256 }
0x1120   :  { %p2089_p9 = scmp.ne.s32.totalorder %s2601_s14, %s2088_s4  ;;  %p2092_p10 = scmp.lt.u32.totalorder %s2088_s4, %s2601_s14 }
0x1122   :  { %p2094_p11 = pnand %p2092_p10, %p2089_p9 }
0x1124   :  { %2097 = shalt.err (!%p2094_p11)
}
0x1125   :  { %s2121_s23 = smov 128   ;;  %s2122_s3 = smov 8  }
0x1126   :  { %1647 = dma.vmem_to_hbm [thread:$0]  %s1642_s10, 256, %s2601_s14, [#allocation4], %s2121_s23, %s2121_s23, %s2122_s3  }
0x1127   :  { %2104 = dma.done.wait [#allocation4], 256  }
0x1128   :  { %2105 = vsyncadd [#allocation4], 4294967040 }
0x1129   :  { %1651 = vsyncpa [#allocation3], 1 }
0x112a   :  { %1652 = vsyncpa [#allocation6], 1 }
0x112b   :  { %1653 = vsyncpa [#allocation9], 1 }
0x112c   :  { %1654 = vsyncpa [#allocation4], 1 }

</bundles_post_ra>
